<compile_context>
chip_gen: v5e
topology: v5e:2x2
jax: 0.10.0
libtpu: 0.0.40
codegen_flags: <defaults>
</compile_context>

<pallas_src>
import math
from functools import partial

import jax
import jax.numpy as jnp
from jax.experimental import pallas as pl
from jax.experimental.pallas import tpu as pltpu

LN_EPS = 1e-5
NEG_INF = -1e30  # additive causal-mask value (matches -inf after softmax)


# ---------------------------------------------------------------------------
# Fused kernel: positional encoding + all encoder layers
# ---------------------------------------------------------------------------
def fused_encoder_kernel(nhead, seq_len,
                         x_ref, pe_ref,
                         wqkv_ref, bqkv_ref, wo_ref, bo_ref,
                         ln1w_ref, ln1b_ref,
                         w1_ref, b1_ref, w2_ref, b2_ref,
                         ln2w_ref, ln2b_ref,
                         o_ref):
    """grid=(nlayers,).  o_ref (B*S, D) holds the activation (batch-major,
    flat tokens), resident in VMEM across grid steps (constant out index)."""
    M, D = o_ref.shape
    S = seq_len
    B = M // S
    H = nhead
    hd = D // H
    scale = 1.0 / math.sqrt(hd)

    # --- first grid step: add positional encoding (dropout = identity) ------
    @pl.when(pl.program_id(0) == 0)
    def _():
        o_ref[...] = x_ref[...] + pe_ref[...]          # (B*S, D) + (B*S, D)

    x2 = o_ref[...]                                     # carried activation

    # --- fused QKV projection: one (M, D) @ (D, 3D) matmul -------------------
    qkv = jnp.dot(x2, wqkv_ref[...],
                  preferred_element_type=jnp.float32) + bqkv_ref[...]
    q = qkv[:, 0 * D:1 * D]                             # (M, D)
    k = qkv[:, 1 * D:2 * D]
    v = qkv[:, 2 * D:3 * D]

    # --- causal mask generated on-chip ---------------------------------------
    row = jax.lax.broadcasted_iota(jnp.int32, (S, S), 0)
    col = jax.lax.broadcasted_iota(jnp.int32, (S, S), 1)
    mask = jnp.where(row >= col, jnp.float32(0.0), jnp.float32(NEG_INF))

    wo = wo_ref[...]                                    # (D, D)

    # --- attention: tiny static (batch, head) loop; concat fused into Wo -----
    per_batch = []
    for b in range(B):                                  # B, H static and tiny
        rs = slice(b * S, (b + 1) * S)                  # contiguous token rows
        qb, kb, vb = q[rs], k[rs], v[rs]                # (S, D)
        acc = jnp.zeros((S, D), jnp.float32)
        for h in range(H):
            cs = slice(h * hd, (h + 1) * hd)
            qh, kh, vh = qb[:, cs], kb[:, cs], vb[:, cs]      # (S, hd)
            s_ = jnp.dot(qh, kh.T,
                         preferred_element_type=jnp.float32) * scale + mask
            s_ = s_ - jnp.max(s_, axis=-1, keepdims=True)
            p = jnp.exp(s_)
            p = p * pl.reciprocal(jnp.sum(p, axis=-1, keepdims=True),
                                  approx=True)
            hv = jnp.dot(p, vh, preferred_element_type=jnp.float32)
            # fold the head-concat into the output projection: accumulate
            # head_h @ Wo[h*hd:(h+1)*hd, :] (row-slab of Wo, no lane concat).
            acc = acc + jnp.dot(hv, wo[cs, :],
                                preferred_element_type=jnp.float32)
        per_batch.append(acc)                           # (S, D)
    attn = jnp.concatenate(per_batch, axis=0) + bo_ref[...]   # (M, D)

    # --- residual + LayerNorm 1 (post-norm) -----------------------------------
    y = x2 + attn                                       # dropout1 = identity
    mu = jnp.mean(y, axis=-1, keepdims=True)
    var = jnp.mean((y - mu) ** 2, axis=-1, keepdims=True)
    y = (y - mu) * jax.lax.rsqrt(var + LN_EPS) * ln1w_ref[...] + ln1b_ref[...]

    # --- feed-forward (ReLU), all tokens at once ------------------------------
    h1 = jnp.maximum(
        jnp.dot(y, w1_ref[...], preferred_element_type=jnp.float32)
        + b1_ref[...], 0.0)
    ff = jnp.dot(h1, w2_ref[...], preferred_element_type=jnp.float32) + b2_ref[...]

    # --- residual + LayerNorm 2 ------------------------------------------------
    z = y + ff                                          # dropout2 = identity
    mu2 = jnp.mean(z, axis=-1, keepdims=True)
    var2 = jnp.mean((z - mu2) ** 2, axis=-1, keepdims=True)
    o_ref[...] = ((z - mu2) * jax.lax.rsqrt(var2 + LN_EPS)
                  * ln2w_ref[...] + ln2b_ref[...])


# ---------------------------------------------------------------------------
# Wrapper: one pallas_call for the whole forward
# ---------------------------------------------------------------------------
def transformer_forward(src, params, pe, nhead):
    """src: (S, B, D) -> (S, B, D)   (has_mask=True, timestamps=None, eval)."""
    S, B, D = src.shape
    L = params["wqkv"].shape[0]
    NH = params["w1"].shape[-1]
    M = B * S

    # layout plumbing (outside the kernel, once): batch-major flat token slab
    x_flat = jnp.transpose(src, (1, 0, 2)).reshape(M, D)
    pe_flat = jnp.broadcast_to(pe[:S, 0, :][None, :, :], (B, S, D)).reshape(M, D)

    tok_spec = pl.BlockSpec((M, D), lambda l: (0, 0))   # fetched once, resident

    def lspec(shape):                                   # per-layer weight slab
        return pl.BlockSpec((None,) + shape, lambda l: (l,) + (0,) * len(shape))

    in_specs = [
        tok_spec,                                       # src (flat)
        tok_spec,                                       # positional encoding
        lspec((D, 3 * D)),                              # wqkv  (L, D, 3D)
        lspec((1, 3 * D)),                              # bqkv  (L, 1, 3D)
        lspec((D, D)),                                  # wo
        lspec((1, D)),                                  # bo
        lspec((1, D)),                                  # ln1w
        lspec((1, D)),                                  # ln1b
        lspec((D, NH)),                                 # w1
        lspec((1, NH)),                                 # b1
        lspec((NH, D)),                                 # w2
        lspec((1, D)),                                  # b2
        lspec((1, D)),                                  # ln2w
        lspec((1, D)),                                  # ln2b
    ]

    out = pl.pallas_call(
        partial(fused_encoder_kernel, nhead, S),
        out_shape=jax.ShapeDtypeStruct((M, D), jnp.float32),
        grid=(L,),
        in_specs=in_specs,
        out_specs=tok_spec,                             # resident accumulator
        compiler_params=pltpu.CompilerParams(
            dimension_semantics=("arbitrary",)),        # layers are sequential
    )(x_flat, pe_flat,
      params["wqkv"], params["bqkv"], params["wo"], params["bo"],
      params["ln1w"], params["ln1b"], params["w1"], params["b1"],
      params["w2"], params["b2"], params["ln2w"], params["ln2b"])

    return out.reshape(B, S, D).transpose(1, 0, 2)      # back to (S, B, D)


# ---------------------------------------------------------------------------
# Deterministic parameter / buffer construction (stacked over layers)
# ---------------------------------------------------------------------------
def make_pe(d_model, max_len=64):
    position = jnp.arange(max_len, dtype=jnp.float32)[:, None]
    div_term = jnp.exp(jnp.arange(0, d_model, 2, dtype=jnp.float32)
                       * (-math.log(10000.0) / d_model))
    # interleave: even cols = sin, odd cols = cos
    pe = jnp.stack([jnp.sin(position * div_term),
                    jnp.cos(position * div_term)], axis=-1)
    return pe.reshape(max_len, 1, d_model)              # (max_len, 1, D)


def init_params(key, nlayers, d_model, nhid):
    s = 0.1
    names = ["wqkv", "bqkv", "wo", "bo", "ln1w", "ln1b",
             "w1", "b1", "w2", "b2", "ln2w", "ln2b"]
    lists = {n: [] for n in names}
    for _ in range(nlayers):
        key, kq, kk, kv, kb, ko, k1, k2 = jax.random.split(key, 8)
        # weights stored in x @ W layout (i.e. PyTorch weight transposed)
        wq = jax.random.normal(kq, (d_model, d_model), jnp.float32) * s
        wk = jax.random.normal(kk, (d_model, d_model), jnp.float32) * s
        wv = jax.random.normal(kv, (d_model, d_model), jnp.float32) * s
        lists["wqkv"].append(jnp.concatenate([wq, wk, wv], axis=1))   # (D, 3D)
        lists["bqkv"].append(jax.random.normal(kb, (1, 3 * d_model),
                                               jnp.float32) * s)
        lists["wo"].append(jax.random.normal(ko, (d_model, d_model),
                                             jnp.float32) * s)
        lists["bo"].append(jnp.zeros((1, d_model), jnp.float32))
        lists["ln1w"].append(jnp.ones((1, d_model), jnp.float32))
        lists["ln1b"].append(jnp.zeros((1, d_model), jnp.float32))
        lists["w1"].append(jax.random.normal(k1, (d_model, nhid),
                                             jnp.float32) * s)
        lists["b1"].append(jnp.zeros((1, nhid), jnp.float32))
        lists["w2"].append(jax.random.normal(k2, (nhid, d_model),
                                             jnp.float32) * s)
        lists["b2"].append(jnp.zeros((1, d_model), jnp.float32))
        lists["ln2w"].append(jnp.ones((1, d_model), jnp.float32))
        lists["ln2b"].append(jnp.zeros((1, d_model), jnp.float32))
    return {n: jnp.stack(v, axis=0) for n, v in lists.items()}


# ---------------------------------------------------------------------------
# Pure-JAX reference (correctness check)
# ---------------------------------------------------------------------------
def _ref_layer_norm(x, w, b):
    mu = jnp.mean(x, axis=-1, keepdims=True)
    var = jnp.mean((x - mu) ** 2, axis=-1, keepdims=True)
    return (x - mu) / jnp.sqrt(var + LN_EPS) * w + b


def ref_forward(src, P, pe, nhead):
    S, B, D = src.shape
    H, hd = nhead, D // nhead
    x = src + pe[:S]                                    # (S,B,D) + (S,1,D)
    mask = jnp.where(jnp.tril(jnp.ones((S, S), dtype=bool)), 0.0, NEG_INF)
    L = P["wqkv"].shape[0]
    for l in range(L):
        x2 = x.reshape(S * B, D)
        qkv = x2 @ P["wqkv"][l] + P["bqkv"][l]
        q = qkv[:, 0 * D:1 * D].reshape(S, B, H, hd)
        k = qkv[:, 1 * D:2 * D].reshape(S, B, H, hd)
        v = qkv[:, 2 * D:3 * D].reshape(S, B, H, hd)
        s = jnp.einsum("qbhd,kbhd->bhqk", q, k) / math.sqrt(hd) + mask
        a = jax.nn.softmax(s, axis=-1)
        o = jnp.einsum("bhqk,kbhd->qbhd", a, v).reshape(S * B, D)
        o = o @ P["wo"][l] + P["bo"][l]
        y = _ref_layer_norm(x2 + o, P["ln1w"][l], P["ln1b"][l])
        ff = jnp.maximum(y @ P["w1"][l] + P["b1"][l], 0.0) @ P["w2"][l] + P["b2"][l]
        x = _ref_layer_norm(y + ff, P["ln2w"][l], P["ln2b"][l]).reshape(S, B, D)
    return x


# ---------------------------------------------------------------------------
if __name__ == "__main__":
    S, B = 8, 2                                 # seq len, batch
    NINP, NHEAD, NHID, NLAYERS = 32, 4, 64, 2

    key = jax.random.PRNGKey(0)
    k_src, k_par = jax.random.split(key)
    src = jax.random.normal(k_src, (S, B, NINP), jnp.float32)

    params = init_params(k_par, NLAYERS, NINP, NHID)
    pe = make_pe(NINP, max_len=64)

    out = transformer_forward(src, params, pe, NHEAD)
    out = jax.block_until_ready(out)

    ref = ref_forward(src, params, pe, NHEAD)
    assert out.shape == (S, B, NINP), out.shape
    # tolerance covers the EUP approx-reciprocal / rsqrt fast paths
    max_err = float(jnp.max(jnp.abs(out - ref)))
    assert jnp.allclose(out, ref, atol=1e-2, rtol=1e-2), max_err

    print("KERNEL_OK")
</pallas_src>

<mosaic_0001>
module attributes {stable_mosaic.version = 11 : i64} {
  func.func @fused_encoder_kernel(%arg0: i32, %arg1: memref<16x32xf32, #tpu.memory_space<vmem>>, %arg2: memref<16x32xf32, #tpu.memory_space<vmem>>, %arg3: memref<1x32x96xf32, #tpu.memory_space<vmem>>, %arg4: memref<1x1x96xf32, #tpu.memory_space<vmem>>, %arg5: memref<1x32x32xf32, #tpu.memory_space<vmem>>, %arg6: memref<1x1x32xf32, #tpu.memory_space<vmem>>, %arg7: memref<1x1x32xf32, #tpu.memory_space<vmem>>, %arg8: memref<1x1x32xf32, #tpu.memory_space<vmem>>, %arg9: memref<1x32x64xf32, #tpu.memory_space<vmem>>, %arg10: memref<1x1x64xf32, #tpu.memory_space<vmem>>, %arg11: memref<1x64x32xf32, #tpu.memory_space<vmem>>, %arg12: memref<1x1x32xf32, #tpu.memory_space<vmem>>, %arg13: memref<1x1x32xf32, #tpu.memory_space<vmem>>, %arg14: memref<1x1x32xf32, #tpu.memory_space<vmem>>, %arg15: memref<16x32xf32, #tpu.memory_space<vmem>>) attributes {dimension_semantics = [#tpu.dimension_semantics<arbitrary>], iteration_bounds = array<i64: 2>, scalar_prefetch = 0 : i64, scratch_operands = 0 : i64, tpu.core_type = #tpu.core_type<tc>, window_params = [{pipeline_mode = #tpu.pipeline_mode<synchronous>, transform_indices = @transform_0, window_bounds = array<i64: 16, 32>}, {pipeline_mode = #tpu.pipeline_mode<synchronous>, transform_indices = @transform_1, window_bounds = array<i64: 16, 32>}, {transform_indices = @transform_2, window_bounds = array<i64: 1, 32, 96>}, {transform_indices = @transform_3, window_bounds = array<i64: 1, 1, 96>}, {transform_indices = @transform_4, window_bounds = array<i64: 1, 32, 32>}, {transform_indices = @transform_5, window_bounds = array<i64: 1, 1, 32>}, {transform_indices = @transform_6, window_bounds = array<i64: 1, 1, 32>}, {transform_indices = @transform_7, window_bounds = array<i64: 1, 1, 32>}, {transform_indices = @transform_8, window_bounds = array<i64: 1, 32, 64>}, {transform_indices = @transform_9, window_bounds = array<i64: 1, 1, 64>}, {transform_indices = @transform_10, window_bounds = array<i64: 1, 64, 32>}, {transform_indices = @transform_11, window_bounds = array<i64: 1, 1, 32>}, {transform_indices = @transform_12, window_bounds = array<i64: 1, 1, 32>}, {transform_indices = @transform_13, window_bounds = array<i64: 1, 1, 32>}, {pipeline_mode = #tpu.pipeline_mode<synchronous>, transform_indices = @transform_14, window_bounds = array<i64: 16, 32>}]} {
    %c0_i32 = arith.constant 0 : i32
    %0 = arith.cmpi eq, %arg0, %c0_i32 : i32
    %1 = arith.extui %0 : i1 to i32
    %c0_i32_0 = arith.constant 0 : i32
    %2 = arith.cmpi ne, %1, %c0_i32_0 : i32
    scf.if %2 {
      %c0_105 = arith.constant 0 : index
      %c0_106 = arith.constant 0 : index
      %282 = vector.load %arg1[%c0_105, %c0_106] : memref<16x32xf32, #tpu.memory_space<vmem>>, vector<16x32xf32>
      %c0_107 = arith.constant 0 : index
      %c0_108 = arith.constant 0 : index
      %283 = vector.load %arg2[%c0_107, %c0_108] : memref<16x32xf32, #tpu.memory_space<vmem>>, vector<16x32xf32>
      %284 = arith.addf %282, %283 : vector<16x32xf32>
      %c0_109 = arith.constant 0 : index
      %c0_110 = arith.constant 0 : index
      %285 = vector.load %arg15[%c0_109, %c0_110] : memref<16x32xf32, #tpu.memory_space<vmem>>, vector<16x32xf32>
      tpu.vector_store %arg15[%c0_109, %c0_110], %284 {strides = array<i32>} : memref<16x32xf32, #tpu.memory_space<vmem>>, vector<16x32xf32>,
    } else {
    }
    %c0 = arith.constant 0 : index
    %c0_1 = arith.constant 0 : index
    %3 = vector.load %arg15[%c0, %c0_1] : memref<16x32xf32, #tpu.memory_space<vmem>>, vector<16x32xf32>
    %c0_2 = arith.constant 0 : index
    %c0_3 = arith.constant 0 : index
    %c0_4 = arith.constant 0 : index
    %4 = vector.load %arg3[%c0_2, %c0_3, %c0_4] : memref<1x32x96xf32, #tpu.memory_space<vmem>>, vector<1x32x96xf32>
    %5 = vector.shape_cast %4 : vector<1x32x96xf32> to vector<32x96xf32>
    %cst = arith.constant dense<0.000000e+00> : vector<16x96xf32>
    %6 = tpu.matmul %3, %5, %cst {dimension_numbers = #tpu.dot_dimension_numbers<[1], [0], [0], [1], [0, 0, 1, 1], [], []>} : vector<16x32xf32>, vector<32x96xf32>, vector<16x96xf32> -> vector<16x96xf32>
    %c0_5 = arith.constant 0 : index
    %c0_6 = arith.constant 0 : index
    %c0_7 = arith.constant 0 : index
    %7 = vector.load %arg4[%c0_5, %c0_6, %c0_7] : memref<1x1x96xf32, #tpu.memory_space<vmem>>, vector<1x1x96xf32>
    %8 = vector.shape_cast %7 : vector<1x1x96xf32> to vector<1x96xf32>
    %9 = vector.broadcast %8 : vector<1x96xf32> to vector<16x96xf32>
    %10 = arith.addf %6, %9 : vector<16x96xf32>
    %11 = vector.extract_strided_slice %10 {offsets = [0, 0], sizes = [16, 32], strides = [1, 1]} : vector<16x96xf32> to vector<16x32xf32>
    %12 = vector.extract_strided_slice %10 {offsets = [0, 32], sizes = [16, 32], strides = [1, 1]} : vector<16x96xf32> to vector<16x32xf32>
    %13 = vector.extract_strided_slice %10 {offsets = [0, 64], sizes = [16, 32], strides = [1, 1]} : vector<16x96xf32> to vector<16x32xf32>
    %14 = tpu.iota {dimensions = array<i32: 0>} : vector<8x8xi32>
    %15 = tpu.iota {dimensions = array<i32: 1>} : vector<8x8xi32>
    %16 = arith.cmpi sge, %14, %15 : vector<8x8xi32>
    %cst_8 = arith.constant 0.000000e+00 : f32
    %cst_9 = arith.constant -1.000000e+30 : f32
    %17 = vector.broadcast %cst_8 : f32 to vector<8x8xf32>
    %18 = vector.broadcast %cst_9 : f32 to vector<8x8xf32>
    %19 = arith.select %16, %17, %18 : vector<8x8xi1>, vector<8x8xf32>
    %c0_10 = arith.constant 0 : index
    %c0_11 = arith.constant 0 : index
    %c0_12 = arith.constant 0 : index
    %20 = vector.load %arg5[%c0_10, %c0_11, %c0_12] : memref<1x32x32xf32, #tpu.memory_space<vmem>>, vector<1x32x32xf32>
    %21 = vector.shape_cast %20 : vector<1x32x32xf32> to vector<32x32xf32>
    %22 = vector.extract_strided_slice %11 {offsets = [0, 0], sizes = [8, 32], strides = [1, 1]} : vector<16x32xf32> to vector<8x32xf32>
    %23 = vector.extract_strided_slice %12 {offsets = [0, 0], sizes = [8, 32], strides = [1, 1]} : vector<16x32xf32> to vector<8x32xf32>
    %24 = vector.extract_strided_slice %13 {offsets = [0, 0], sizes = [8, 32], strides = [1, 1]} : vector<16x32xf32> to vector<8x32xf32>
    %cst_13 = arith.constant 0.000000e+00 : f32
    %25 = vector.broadcast %cst_13 : f32 to vector<8x32xf32>
    %26 = vector.extract_strided_slice %22 {offsets = [0, 0], sizes = [8, 8], strides = [1, 1]} : vector<8x32xf32> to vector<8x8xf32>
    %27 = vector.extract_strided_slice %23 {offsets = [0, 0], sizes = [8, 8], strides = [1, 1]} : vector<8x32xf32> to vector<8x8xf32>
    %28 = vector.extract_strided_slice %24 {offsets = [0, 0], sizes = [8, 8], strides = [1, 1]} : vector<8x32xf32> to vector<8x8xf32>
    %29 = tpu.transpose %27, [1, 0] : vector<8x8xf32> -> vector<8x8xf32>
    %cst_14 = arith.constant dense<0.000000e+00> : vector<8x8xf32>
    %30 = tpu.matmul %26, %29, %cst_14 {dimension_numbers = #tpu.dot_dimension_numbers<[1], [0], [0], [1], [0, 0, 1, 1], [], []>} : vector<8x8xf32>, vector<8x8xf32>, vector<8x8xf32> -> vector<8x8xf32>
    %cst_15 = arith.constant 0.353553385 : f32
    %31 = vector.broadcast %cst_15 : f32 to vector<8x8xf32>
    %32 = arith.mulf %30, %31 : vector<8x8xf32>
    %33 = arith.addf %32, %19 : vector<8x8xf32>
    %cst_16 = arith.constant dense<0xFF800000> : vector<8xf32>
    %34 = vector.multi_reduction <maximumf>, %33, %cst_16 [1] : vector<8x8xf32> to vector<8xf32>
    %35 = vector.shape_cast %34 : vector<8xf32> to vector<8x1xf32>
    %36 = vector.broadcast %35 : vector<8x1xf32> to vector<8x8xf32>
    %37 = arith.subf %33, %36 : vector<8x8xf32>
    %38 = math.exp %37 : vector<8x8xf32>
    %cst_17 = arith.constant dense<0.000000e+00> : vector<8xf32>
    %39 = vector.multi_reduction <add>, %38, %cst_17 [1] : vector<8x8xf32> to vector<8xf32>
    %40 = vector.shape_cast %39 : vector<8xf32> to vector<8x1xf32>
    %41 = tpu.reciprocal %40 {approx = true} : vector<8x1xf32> -> vector<8x1xf32>
    %42 = vector.broadcast %41 : vector<8x1xf32> to vector<8x8xf32>
    %43 = arith.mulf %38, %42 : vector<8x8xf32>
    %cst_18 = arith.constant dense<0.000000e+00> : vector<8x8xf32>
    %44 = tpu.matmul %43, %28, %cst_18 {dimension_numbers = #tpu.dot_dimension_numbers<[1], [0], [0], [1], [0, 0, 1, 1], [], []>} : vector<8x8xf32>, vector<8x8xf32>, vector<8x8xf32> -> vector<8x8xf32>
    %45 = vector.extract_strided_slice %21 {offsets = [0, 0], sizes = [8, 32], strides = [1, 1]} : vector<32x32xf32> to vector<8x32xf32>
    %cst_19 = arith.constant dense<0.000000e+00> : vector<8x32xf32>
    %46 = tpu.matmul %44, %45, %cst_19 {dimension_numbers = #tpu.dot_dimension_numbers<[1], [0], [0], [1], [0, 0, 1, 1], [], []>} : vector<8x8xf32>, vector<8x32xf32>, vector<8x32xf32> -> vector<8x32xf32>
    %47 = arith.addf %25, %46 : vector<8x32xf32>
    %48 = vector.extract_strided_slice %22 {offsets = [0, 8], sizes = [8, 8], strides = [1, 1]} : vector<8x32xf32> to vector<8x8xf32>
    %49 = vector.extract_strided_slice %23 {offsets = [0, 8], sizes = [8, 8], strides = [1, 1]} : vector<8x32xf32> to vector<8x8xf32>
    %50 = vector.extract_strided_slice %24 {offsets = [0, 8], sizes = [8, 8], strides = [1, 1]} : vector<8x32xf32> to vector<8x8xf32>
    %51 = tpu.transpose %49, [1, 0] : vector<8x8xf32> -> vector<8x8xf32>
    %cst_20 = arith.constant dense<0.000000e+00> : vector<8x8xf32>
    %52 = tpu.matmul %48, %51, %cst_20 {dimension_numbers = #tpu.dot_dimension_numbers<[1], [0], [0], [1], [0, 0, 1, 1], [], []>} : vector<8x8xf32>, vector<8x8xf32>, vector<8x8xf32> -> vector<8x8xf32>
    %cst_21 = arith.constant 0.353553385 : f32
    %53 = vector.broadcast %cst_21 : f32 to vector<8x8xf32>
    %54 = arith.mulf %52, %53 : vector<8x8xf32>
    %55 = arith.addf %54, %19 : vector<8x8xf32>
    %cst_22 = arith.constant dense<0xFF800000> : vector<8xf32>
    %56 = vector.multi_reduction <maximumf>, %55, %cst_22 [1] : vector<8x8xf32> to vector<8xf32>
    %57 = vector.shape_cast %56 : vector<8xf32> to vector<8x1xf32>
    %58 = vector.broadcast %57 : vector<8x1xf32> to vector<8x8xf32>
    %59 = arith.subf %55, %58 : vector<8x8xf32>
    %60 = math.exp %59 : vector<8x8xf32>
    %cst_23 = arith.constant dense<0.000000e+00> : vector<8xf32>
    %61 = vector.multi_reduction <add>, %60, %cst_23 [1] : vector<8x8xf32> to vector<8xf32>
    %62 = vector.shape_cast %61 : vector<8xf32> to vector<8x1xf32>
    %63 = tpu.reciprocal %62 {approx = true} : vector<8x1xf32> -> vector<8x1xf32>
    %64 = vector.broadcast %63 : vector<8x1xf32> to vector<8x8xf32>
    %65 = arith.mulf %60, %64 : vector<8x8xf32>
    %cst_24 = arith.constant dense<0.000000e+00> : vector<8x8xf32>
    %66 = tpu.matmul %65, %50, %cst_24 {dimension_numbers = #tpu.dot_dimension_numbers<[1], [0], [0], [1], [0, 0, 1, 1], [], []>} : vector<8x8xf32>, vector<8x8xf32>, vector<8x8xf32> -> vector<8x8xf32>
    %67 = vector.extract_strided_slice %21 {offsets = [8, 0], sizes = [8, 32], strides = [1, 1]} : vector<32x32xf32> to vector<8x32xf32>
    %cst_25 = arith.constant dense<0.000000e+00> : vector<8x32xf32>
    %68 = tpu.matmul %66, %67, %cst_25 {dimension_numbers = #tpu.dot_dimension_numbers<[1], [0], [0], [1], [0, 0, 1, 1], [], []>} : vector<8x8xf32>, vector<8x32xf32>, vector<8x32xf32> -> vector<8x32xf32>
    %69 = arith.addf %47, %68 : vector<8x32xf32>
    %70 = vector.extract_strided_slice %22 {offsets = [0, 16], sizes = [8, 8], strides = [1, 1]} : vector<8x32xf32> to vector<8x8xf32>
    %71 = vector.extract_strided_slice %23 {offsets = [0, 16], sizes = [8, 8], strides = [1, 1]} : vector<8x32xf32> to vector<8x8xf32>
    %72 = vector.extract_strided_slice %24 {offsets = [0, 16], sizes = [8, 8], strides = [1, 1]} : vector<8x32xf32> to vector<8x8xf32>
    %73 = tpu.transpose %71, [1, 0] : vector<8x8xf32> -> vector<8x8xf32>
    %cst_26 = arith.constant dense<0.000000e+00> : vector<8x8xf32>
    %74 = tpu.matmul %70, %73, %cst_26 {dimension_numbers = #tpu.dot_dimension_numbers<[1], [0], [0], [1], [0, 0, 1, 1], [], []>} : vector<8x8xf32>, vector<8x8xf32>, vector<8x8xf32> -> vector<8x8xf32>
    %cst_27 = arith.constant 0.353553385 : f32
    %75 = vector.broadcast %cst_27 : f32 to vector<8x8xf32>
    %76 = arith.mulf %74, %75 : vector<8x8xf32>
    %77 = arith.addf %76, %19 : vector<8x8xf32>
    %cst_28 = arith.constant dense<0xFF800000> : vector<8xf32>
    %78 = vector.multi_reduction <maximumf>, %77, %cst_28 [1] : vector<8x8xf32> to vector<8xf32>
    %79 = vector.shape_cast %78 : vector<8xf32> to vector<8x1xf32>
    %80 = vector.broadcast %79 : vector<8x1xf32> to vector<8x8xf32>
    %81 = arith.subf %77, %80 : vector<8x8xf32>
    %82 = math.exp %81 : vector<8x8xf32>
    %cst_29 = arith.constant dense<0.000000e+00> : vector<8xf32>
    %83 = vector.multi_reduction <add>, %82, %cst_29 [1] : vector<8x8xf32> to vector<8xf32>
    %84 = vector.shape_cast %83 : vector<8xf32> to vector<8x1xf32>
    %85 = tpu.reciprocal %84 {approx = true} : vector<8x1xf32> -> vector<8x1xf32>
    %86 = vector.broadcast %85 : vector<8x1xf32> to vector<8x8xf32>
    %87 = arith.mulf %82, %86 : vector<8x8xf32>
    %cst_30 = arith.constant dense<0.000000e+00> : vector<8x8xf32>
    %88 = tpu.matmul %87, %72, %cst_30 {dimension_numbers = #tpu.dot_dimension_numbers<[1], [0], [0], [1], [0, 0, 1, 1], [], []>} : vector<8x8xf32>, vector<8x8xf32>, vector<8x8xf32> -> vector<8x8xf32>
    %89 = vector.extract_strided_slice %21 {offsets = [16, 0], sizes = [8, 32], strides = [1, 1]} : vector<32x32xf32> to vector<8x32xf32>
    %cst_31 = arith.constant dense<0.000000e+00> : vector<8x32xf32>
    %90 = tpu.matmul %88, %89, %cst_31 {dimension_numbers = #tpu.dot_dimension_numbers<[1], [0], [0], [1], [0, 0, 1, 1], [], []>} : vector<8x8xf32>, vector<8x32xf32>, vector<8x32xf32> -> vector<8x32xf32>
    %91 = arith.addf %69, %90 : vector<8x32xf32>
    %92 = vector.extract_strided_slice %22 {offsets = [0, 24], sizes = [8, 8], strides = [1, 1]} : vector<8x32xf32> to vector<8x8xf32>
    %93 = vector.extract_strided_slice %23 {offsets = [0, 24], sizes = [8, 8], strides = [1, 1]} : vector<8x32xf32> to vector<8x8xf32>
    %94 = vector.extract_strided_slice %24 {offsets = [0, 24], sizes = [8, 8], strides = [1, 1]} : vector<8x32xf32> to vector<8x8xf32>
    %95 = tpu.transpose %93, [1, 0] : vector<8x8xf32> -> vector<8x8xf32>
    %cst_32 = arith.constant dense<0.000000e+00> : vector<8x8xf32>
    %96 = tpu.matmul %92, %95, %cst_32 {dimension_numbers = #tpu.dot_dimension_numbers<[1], [0], [0], [1], [0, 0, 1, 1], [], []>} : vector<8x8xf32>, vector<8x8xf32>, vector<8x8xf32> -> vector<8x8xf32>
    %cst_33 = arith.constant 0.353553385 : f32
    %97 = vector.broadcast %cst_33 : f32 to vector<8x8xf32>
    %98 = arith.mulf %96, %97 : vector<8x8xf32>
    %99 = arith.addf %98, %19 : vector<8x8xf32>
    %cst_34 = arith.constant dense<0xFF800000> : vector<8xf32>
    %100 = vector.multi_reduction <maximumf>, %99, %cst_34 [1] : vector<8x8xf32> to vector<8xf32>
    %101 = vector.shape_cast %100 : vector<8xf32> to vector<8x1xf32>
    %102 = vector.broadcast %101 : vector<8x1xf32> to vector<8x8xf32>
    %103 = arith.subf %99, %102 : vector<8x8xf32>
    %104 = math.exp %103 : vector<8x8xf32>
    %cst_35 = arith.constant dense<0.000000e+00> : vector<8xf32>
    %105 = vector.multi_reduction <add>, %104, %cst_35 [1] : vector<8x8xf32> to vector<8xf32>
    %106 = vector.shape_cast %105 : vector<8xf32> to vector<8x1xf32>
    %107 = tpu.reciprocal %106 {approx = true} : vector<8x1xf32> -> vector<8x1xf32>
    %108 = vector.broadcast %107 : vector<8x1xf32> to vector<8x8xf32>
    %109 = arith.mulf %104, %108 : vector<8x8xf32>
    %cst_36 = arith.constant dense<0.000000e+00> : vector<8x8xf32>
    %110 = tpu.matmul %109, %94, %cst_36 {dimension_numbers = #tpu.dot_dimension_numbers<[1], [0], [0], [1], [0, 0, 1, 1], [], []>} : vector<8x8xf32>, vector<8x8xf32>, vector<8x8xf32> -> vector<8x8xf32>
    %111 = vector.extract_strided_slice %21 {offsets = [24, 0], sizes = [8, 32], strides = [1, 1]} : vector<32x32xf32> to vector<8x32xf32>
    %cst_37 = arith.constant dense<0.000000e+00> : vector<8x32xf32>
    %112 = tpu.matmul %110, %111, %cst_37 {dimension_numbers = #tpu.dot_dimension_numbers<[1], [0], [0], [1], [0, 0, 1, 1], [], []>} : vector<8x8xf32>, vector<8x32xf32>, vector<8x32xf32> -> vector<8x32xf32>
    %113 = arith.addf %91, %112 : vector<8x32xf32>
    %114 = vector.extract_strided_slice %11 {offsets = [8, 0], sizes = [8, 32], strides = [1, 1]} : vector<16x32xf32> to vector<8x32xf32>
    %115 = vector.extract_strided_slice %12 {offsets = [8, 0], sizes = [8, 32], strides = [1, 1]} : vector<16x32xf32> to vector<8x32xf32>
    %116 = vector.extract_strided_slice %13 {offsets = [8, 0], sizes = [8, 32], strides = [1, 1]} : vector<16x32xf32> to vector<8x32xf32>
    %cst_38 = arith.constant 0.000000e+00 : f32
    %117 = vector.broadcast %cst_38 : f32 to vector<8x32xf32>
    %118 = vector.extract_strided_slice %114 {offsets = [0, 0], sizes = [8, 8], strides = [1, 1]} : vector<8x32xf32> to vector<8x8xf32>
    %119 = vector.extract_strided_slice %115 {offsets = [0, 0], sizes = [8, 8], strides = [1, 1]} : vector<8x32xf32> to vector<8x8xf32>
    %120 = vector.extract_strided_slice %116 {offsets = [0, 0], sizes = [8, 8], strides = [1, 1]} : vector<8x32xf32> to vector<8x8xf32>
    %121 = tpu.transpose %119, [1, 0] : vector<8x8xf32> -> vector<8x8xf32>
    %cst_39 = arith.constant dense<0.000000e+00> : vector<8x8xf32>
    %122 = tpu.matmul %118, %121, %cst_39 {dimension_numbers = #tpu.dot_dimension_numbers<[1], [0], [0], [1], [0, 0, 1, 1], [], []>} : vector<8x8xf32>, vector<8x8xf32>, vector<8x8xf32> -> vector<8x8xf32>
    %cst_40 = arith.constant 0.353553385 : f32
    %123 = vector.broadcast %cst_40 : f32 to vector<8x8xf32>
    %124 = arith.mulf %122, %123 : vector<8x8xf32>
    %125 = arith.addf %124, %19 : vector<8x8xf32>
    %cst_41 = arith.constant dense<0xFF800000> : vector<8xf32>
    %126 = vector.multi_reduction <maximumf>, %125, %cst_41 [1] : vector<8x8xf32> to vector<8xf32>
    %127 = vector.shape_cast %126 : vector<8xf32> to vector<8x1xf32>
    %128 = vector.broadcast %127 : vector<8x1xf32> to vector<8x8xf32>
    %129 = arith.subf %125, %128 : vector<8x8xf32>
    %130 = math.exp %129 : vector<8x8xf32>
    %cst_42 = arith.constant dense<0.000000e+00> : vector<8xf32>
    %131 = vector.multi_reduction <add>, %130, %cst_42 [1] : vector<8x8xf32> to vector<8xf32>
    %132 = vector.shape_cast %131 : vector<8xf32> to vector<8x1xf32>
    %133 = tpu.reciprocal %132 {approx = true} : vector<8x1xf32> -> vector<8x1xf32>
    %134 = vector.broadcast %133 : vector<8x1xf32> to vector<8x8xf32>
    %135 = arith.mulf %130, %134 : vector<8x8xf32>
    %cst_43 = arith.constant dense<0.000000e+00> : vector<8x8xf32>
    %136 = tpu.matmul %135, %120, %cst_43 {dimension_numbers = #tpu.dot_dimension_numbers<[1], [0], [0], [1], [0, 0, 1, 1], [], []>} : vector<8x8xf32>, vector<8x8xf32>, vector<8x8xf32> -> vector<8x8xf32>
    %137 = vector.extract_strided_slice %21 {offsets = [0, 0], sizes = [8, 32], strides = [1, 1]} : vector<32x32xf32> to vector<8x32xf32>
    %cst_44 = arith.constant dense<0.000000e+00> : vector<8x32xf32>
    %138 = tpu.matmul %136, %137, %cst_44 {dimension_numbers = #tpu.dot_dimension_numbers<[1], [0], [0], [1], [0, 0, 1, 1], [], []>} : vector<8x8xf32>, vector<8x32xf32>, vector<8x32xf32> -> vector<8x32xf32>
    %139 = arith.addf %117, %138 : vector<8x32xf32>
    %140 = vector.extract_strided_slice %114 {offsets = [0, 8], sizes = [8, 8], strides = [1, 1]} : vector<8x32xf32> to vector<8x8xf32>
    %141 = vector.extract_strided_slice %115 {offsets = [0, 8], sizes = [8, 8], strides = [1, 1]} : vector<8x32xf32> to vector<8x8xf32>
    %142 = vector.extract_strided_slice %116 {offsets = [0, 8], sizes = [8, 8], strides = [1, 1]} : vector<8x32xf32> to vector<8x8xf32>
    %143 = tpu.transpose %141, [1, 0] : vector<8x8xf32> -> vector<8x8xf32>
    %cst_45 = arith.constant dense<0.000000e+00> : vector<8x8xf32>
    %144 = tpu.matmul %140, %143, %cst_45 {dimension_numbers = #tpu.dot_dimension_numbers<[1], [0], [0], [1], [0, 0, 1, 1], [], []>} : vector<8x8xf32>, vector<8x8xf32>, vector<8x8xf32> -> vector<8x8xf32>
    %cst_46 = arith.constant 0.353553385 : f32
    %145 = vector.broadcast %cst_46 : f32 to vector<8x8xf32>
    %146 = arith.mulf %144, %145 : vector<8x8xf32>
    %147 = arith.addf %146, %19 : vector<8x8xf32>
    %cst_47 = arith.constant dense<0xFF800000> : vector<8xf32>
    %148 = vector.multi_reduction <maximumf>, %147, %cst_47 [1] : vector<8x8xf32> to vector<8xf32>
    %149 = vector.shape_cast %148 : vector<8xf32> to vector<8x1xf32>
    %150 = vector.broadcast %149 : vector<8x1xf32> to vector<8x8xf32>
    %151 = arith.subf %147, %150 : vector<8x8xf32>
    %152 = math.exp %151 : vector<8x8xf32>
    %cst_48 = arith.constant dense<0.000000e+00> : vector<8xf32>
    %153 = vector.multi_reduction <add>, %152, %cst_48 [1] : vector<8x8xf32> to vector<8xf32>
    %154 = vector.shape_cast %153 : vector<8xf32> to vector<8x1xf32>
    %155 = tpu.reciprocal %154 {approx = true} : vector<8x1xf32> -> vector<8x1xf32>
    %156 = vector.broadcast %155 : vector<8x1xf32> to vector<8x8xf32>
    %157 = arith.mulf %152, %156 : vector<8x8xf32>
    %cst_49 = arith.constant dense<0.000000e+00> : vector<8x8xf32>
    %158 = tpu.matmul %157, %142, %cst_49 {dimension_numbers = #tpu.dot_dimension_numbers<[1], [0], [0], [1], [0, 0, 1, 1], [], []>} : vector<8x8xf32>, vector<8x8xf32>, vector<8x8xf32> -> vector<8x8xf32>
    %159 = vector.extract_strided_slice %21 {offsets = [8, 0], sizes = [8, 32], strides = [1, 1]} : vector<32x32xf32> to vector<8x32xf32>
    %cst_50 = arith.constant dense<0.000000e+00> : vector<8x32xf32>
    %160 = tpu.matmul %158, %159, %cst_50 {dimension_numbers = #tpu.dot_dimension_numbers<[1], [0], [0], [1], [0, 0, 1, 1], [], []>} : vector<8x8xf32>, vector<8x32xf32>, vector<8x32xf32> -> vector<8x32xf32>
    %161 = arith.addf %139, %160 : vector<8x32xf32>
    %162 = vector.extract_strided_slice %114 {offsets = [0, 16], sizes = [8, 8], strides = [1, 1]} : vector<8x32xf32> to vector<8x8xf32>
    %163 = vector.extract_strided_slice %115 {offsets = [0, 16], sizes = [8, 8], strides = [1, 1]} : vector<8x32xf32> to vector<8x8xf32>
    %164 = vector.extract_strided_slice %116 {offsets = [0, 16], sizes = [8, 8], strides = [1, 1]} : vector<8x32xf32> to vector<8x8xf32>
    %165 = tpu.transpose %163, [1, 0] : vector<8x8xf32> -> vector<8x8xf32>
    %cst_51 = arith.constant dense<0.000000e+00> : vector<8x8xf32>
    %166 = tpu.matmul %162, %165, %cst_51 {dimension_numbers = #tpu.dot_dimension_numbers<[1], [0], [0], [1], [0, 0, 1, 1], [], []>} : vector<8x8xf32>, vector<8x8xf32>, vector<8x8xf32> -> vector<8x8xf32>
    %cst_52 = arith.constant 0.353553385 : f32
    %167 = vector.broadcast %cst_52 : f32 to vector<8x8xf32>
    %168 = arith.mulf %166, %167 : vector<8x8xf32>
    %169 = arith.addf %168, %19 : vector<8x8xf32>
    %cst_53 = arith.constant dense<0xFF800000> : vector<8xf32>
    %170 = vector.multi_reduction <maximumf>, %169, %cst_53 [1] : vector<8x8xf32> to vector<8xf32>
    %171 = vector.shape_cast %170 : vector<8xf32> to vector<8x1xf32>
    %172 = vector.broadcast %171 : vector<8x1xf32> to vector<8x8xf32>
    %173 = arith.subf %169, %172 : vector<8x8xf32>
    %174 = math.exp %173 : vector<8x8xf32>
    %cst_54 = arith.constant dense<0.000000e+00> : vector<8xf32>
    %175 = vector.multi_reduction <add>, %174, %cst_54 [1] : vector<8x8xf32> to vector<8xf32>
    %176 = vector.shape_cast %175 : vector<8xf32> to vector<8x1xf32>
    %177 = tpu.reciprocal %176 {approx = true} : vector<8x1xf32> -> vector<8x1xf32>
    %178 = vector.broadcast %177 : vector<8x1xf32> to vector<8x8xf32>
    %179 = arith.mulf %174, %178 : vector<8x8xf32>
    %cst_55 = arith.constant dense<0.000000e+00> : vector<8x8xf32>
    %180 = tpu.matmul %179, %164, %cst_55 {dimension_numbers = #tpu.dot_dimension_numbers<[1], [0], [0], [1], [0, 0, 1, 1], [], []>} : vector<8x8xf32>, vector<8x8xf32>, vector<8x8xf32> -> vector<8x8xf32>
    %181 = vector.extract_strided_slice %21 {offsets = [16, 0], sizes = [8, 32], strides = [1, 1]} : vector<32x32xf32> to vector<8x32xf32>
    %cst_56 = arith.constant dense<0.000000e+00> : vector<8x32xf32>
    %182 = tpu.matmul %180, %181, %cst_56 {dimension_numbers = #tpu.dot_dimension_numbers<[1], [0], [0], [1], [0, 0, 1, 1], [], []>} : vector<8x8xf32>, vector<8x32xf32>, vector<8x32xf32> -> vector<8x32xf32>
    %183 = arith.addf %161, %182 : vector<8x32xf32>
    %184 = vector.extract_strided_slice %114 {offsets = [0, 24], sizes = [8, 8], strides = [1, 1]} : vector<8x32xf32> to vector<8x8xf32>
    %185 = vector.extract_strided_slice %115 {offsets = [0, 24], sizes = [8, 8], strides = [1, 1]} : vector<8x32xf32> to vector<8x8xf32>
    %186 = vector.extract_strided_slice %116 {offsets = [0, 24], sizes = [8, 8], strides = [1, 1]} : vector<8x32xf32> to vector<8x8xf32>
    %187 = tpu.transpose %185, [1, 0] : vector<8x8xf32> -> vector<8x8xf32>
    %cst_57 = arith.constant dense<0.000000e+00> : vector<8x8xf32>
    %188 = tpu.matmul %184, %187, %cst_57 {dimension_numbers = #tpu.dot_dimension_numbers<[1], [0], [0], [1], [0, 0, 1, 1], [], []>} : vector<8x8xf32>, vector<8x8xf32>, vector<8x8xf32> -> vector<8x8xf32>
    %cst_58 = arith.constant 0.353553385 : f32
    %189 = vector.broadcast %cst_58 : f32 to vector<8x8xf32>
    %190 = arith.mulf %188, %189 : vector<8x8xf32>
    %191 = arith.addf %190, %19 : vector<8x8xf32>
    %cst_59 = arith.constant dense<0xFF800000> : vector<8xf32>
    %192 = vector.multi_reduction <maximumf>, %191, %cst_59 [1] : vector<8x8xf32> to vector<8xf32>
    %193 = vector.shape_cast %192 : vector<8xf32> to vector<8x1xf32>
    %194 = vector.broadcast %193 : vector<8x1xf32> to vector<8x8xf32>
    %195 = arith.subf %191, %194 : vector<8x8xf32>
    %196 = math.exp %195 : vector<8x8xf32>
    %cst_60 = arith.constant dense<0.000000e+00> : vector<8xf32>
    %197 = vector.multi_reduction <add>, %196, %cst_60 [1] : vector<8x8xf32> to vector<8xf32>
    %198 = vector.shape_cast %197 : vector<8xf32> to vector<8x1xf32>
    %199 = tpu.reciprocal %198 {approx = true} : vector<8x1xf32> -> vector<8x1xf32>
    %200 = vector.broadcast %199 : vector<8x1xf32> to vector<8x8xf32>
    %201 = arith.mulf %196, %200 : vector<8x8xf32>
    %cst_61 = arith.constant dense<0.000000e+00> : vector<8x8xf32>
    %202 = tpu.matmul %201, %186, %cst_61 {dimension_numbers = #tpu.dot_dimension_numbers<[1], [0], [0], [1], [0, 0, 1, 1], [], []>} : vector<8x8xf32>, vector<8x8xf32>, vector<8x8xf32> -> vector<8x8xf32>
    %203 = vector.extract_strided_slice %21 {offsets = [24, 0], sizes = [8, 32], strides = [1, 1]} : vector<32x32xf32> to vector<8x32xf32>
    %cst_62 = arith.constant dense<0.000000e+00> : vector<8x32xf32>
    %204 = tpu.matmul %202, %203, %cst_62 {dimension_numbers = #tpu.dot_dimension_numbers<[1], [0], [0], [1], [0, 0, 1, 1], [], []>} : vector<8x8xf32>, vector<8x32xf32>, vector<8x32xf32> -> vector<8x32xf32>
    %205 = arith.addf %183, %204 : vector<8x32xf32>
    %206 = tpu.concatenate %113, %205 in 0 : vector<8x32xf32>, vector<8x32xf32> -> vector<16x32xf32>
    %c0_63 = arith.constant 0 : index
    %c0_64 = arith.constant 0 : index
    %c0_65 = arith.constant 0 : index
    %207 = vector.load %arg6[%c0_63, %c0_64, %c0_65] : memref<1x1x32xf32, #tpu.memory_space<vmem>>, vector<1x1x32xf32>
    %208 = vector.shape_cast %207 : vector<1x1x32xf32> to vector<1x32xf32>
    %209 = vector.broadcast %208 : vector<1x32xf32> to vector<16x32xf32>
    %210 = arith.addf %206, %209 : vector<16x32xf32>
    %211 = arith.addf %3, %210 : vector<16x32xf32>
    %cst_66 = arith.constant dense<0.000000e+00> : vector<16xf32>
    %212 = vector.multi_reduction <add>, %211, %cst_66 [1] : vector<16x32xf32> to vector<16xf32>
    %213 = vector.shape_cast %212 : vector<16xf32> to vector<16x1xf32>
    %cst_67 = arith.constant 3.200000e+01 : f32
    %214 = vector.broadcast %cst_67 : f32 to vector<16x1xf32>
    %215 = arith.divf %213, %214 : vector<16x1xf32>
    %216 = vector.broadcast %215 : vector<16x1xf32> to vector<16x32xf32>
    %217 = arith.subf %211, %216 : vector<16x32xf32>
    %218 = arith.mulf %217, %217 : vector<16x32xf32>
    %cst_68 = arith.constant dense<0.000000e+00> : vector<16xf32>
    %219 = vector.multi_reduction <add>, %218, %cst_68 [1] : vector<16x32xf32> to vector<16xf32>
    %220 = vector.shape_cast %219 : vector<16xf32> to vector<16x1xf32>
    %cst_69 = arith.constant 3.200000e+01 : f32
    %221 = vector.broadcast %cst_69 : f32 to vector<16x1xf32>
    %222 = arith.divf %220, %221 : vector<16x1xf32>
    %223 = vector.broadcast %215 : vector<16x1xf32> to vector<16x32xf32>
    %224 = arith.subf %211, %223 : vector<16x32xf32>
    %cst_70 = arith.constant 9.99999974E-6 : f32
    %225 = vector.broadcast %cst_70 : f32 to vector<16x1xf32>
    %226 = arith.addf %222, %225 : vector<16x1xf32>
    %227 = math.rsqrt %226 : vector<16x1xf32>
    %228 = vector.broadcast %227 : vector<16x1xf32> to vector<16x32xf32>
    %229 = arith.mulf %224, %228 : vector<16x32xf32>
    %c0_71 = arith.constant 0 : index
    %c0_72 = arith.constant 0 : index
    %c0_73 = arith.constant 0 : index
    %230 = vector.load %arg7[%c0_71, %c0_72, %c0_73] : memref<1x1x32xf32, #tpu.memory_space<vmem>>, vector<1x1x32xf32>
    %231 = vector.shape_cast %230 : vector<1x1x32xf32> to vector<1x32xf32>
    %232 = vector.broadcast %231 : vector<1x32xf32> to vector<16x32xf32>
    %233 = arith.mulf %229, %232 : vector<16x32xf32>
    %c0_74 = arith.constant 0 : index
    %c0_75 = arith.constant 0 : index
    %c0_76 = arith.constant 0 : index
    %234 = vector.load %arg8[%c0_74, %c0_75, %c0_76] : memref<1x1x32xf32, #tpu.memory_space<vmem>>, vector<1x1x32xf32>
    %235 = vector.shape_cast %234 : vector<1x1x32xf32> to vector<1x32xf32>
    %236 = vector.broadcast %235 : vector<1x32xf32> to vector<16x32xf32>
    %237 = arith.addf %233, %236 : vector<16x32xf32>
    %c0_77 = arith.constant 0 : index
    %c0_78 = arith.constant 0 : index
    %c0_79 = arith.constant 0 : index
    %238 = vector.load %arg9[%c0_77, %c0_78, %c0_79] : memref<1x32x64xf32, #tpu.memory_space<vmem>>, vector<1x32x64xf32>
    %239 = vector.shape_cast %238 : vector<1x32x64xf32> to vector<32x64xf32>
    %cst_80 = arith.constant dense<0.000000e+00> : vector<16x64xf32>
    %240 = tpu.matmul %237, %239, %cst_80 {dimension_numbers = #tpu.dot_dimension_numbers<[1], [0], [0], [1], [0, 0, 1, 1], [], []>} : vector<16x32xf32>, vector<32x64xf32>, vector<16x64xf32> -> vector<16x64xf32>
    %c0_81 = arith.constant 0 : index
    %c0_82 = arith.constant 0 : index
    %c0_83 = arith.constant 0 : index
    %241 = vector.load %arg10[%c0_81, %c0_82, %c0_83] : memref<1x1x64xf32, #tpu.memory_space<vmem>>, vector<1x1x64xf32>
    %242 = vector.shape_cast %241 : vector<1x1x64xf32> to vector<1x64xf32>
    %243 = vector.broadcast %242 : vector<1x64xf32> to vector<16x64xf32>
    %244 = arith.addf %240, %243 : vector<16x64xf32>
    %cst_84 = arith.constant 0.000000e+00 : f32
    %245 = vector.broadcast %cst_84 : f32 to vector<16x64xf32>
    %246 = arith.maximumf %244, %245 : vector<16x64xf32>
    %c0_85 = arith.constant 0 : index
    %c0_86 = arith.constant 0 : index
    %c0_87 = arith.constant 0 : index
    %247 = vector.load %arg11[%c0_85, %c0_86, %c0_87] : memref<1x64x32xf32, #tpu.memory_space<vmem>>, vector<1x64x32xf32>
    %248 = vector.shape_cast %247 : vector<1x64x32xf32> to vector<64x32xf32>
    %cst_88 = arith.constant dense<0.000000e+00> : vector<16x32xf32>
    %249 = tpu.matmul %246, %248, %cst_88 {dimension_numbers = #tpu.dot_dimension_numbers<[1], [0], [0], [1], [0, 0, 1, 1], [], []>} : vector<16x64xf32>, vector<64x32xf32>, vector<16x32xf32> -> vector<16x32xf32>
    %c0_89 = arith.constant 0 : index
    %c0_90 = arith.constant 0 : index
    %c0_91 = arith.constant 0 : index
    %250 = vector.load %arg12[%c0_89, %c0_90, %c0_91] : memref<1x1x32xf32, #tpu.memory_space<vmem>>, vector<1x1x32xf32>
    %251 = vector.shape_cast %250 : vector<1x1x32xf32> to vector<1x32xf32>
    %252 = vector.broadcast %251 : vector<1x32xf32> to vector<16x32xf32>
    %253 = arith.addf %249, %252 : vector<16x32xf32>
    %254 = arith.addf %237, %253 : vector<16x32xf32>
    %cst_92 = arith.constant dense<0.000000e+00> : vector<16xf32>
    %255 = vector.multi_reduction <add>, %254, %cst_92 [1] : vector<16x32xf32> to vector<16xf32>
    %256 = vector.shape_cast %255 : vector<16xf32> to vector<16x1xf32>
    %cst_93 = arith.constant 3.200000e+01 : f32
    %257 = vector.broadcast %cst_93 : f32 to vector<16x1xf32>
    %258 = arith.divf %256, %257 : vector<16x1xf32>
    %259 = vector.broadcast %258 : vector<16x1xf32> to vector<16x32xf32>
    %260 = arith.subf %254, %259 : vector<16x32xf32>
    %261 = arith.mulf %260, %260 : vector<16x32xf32>
    %cst_94 = arith.constant dense<0.000000e+00> : vector<16xf32>
    %262 = vector.multi_reduction <add>, %261, %cst_94 [1] : vector<16x32xf32> to vector<16xf32>
    %263 = vector.shape_cast %262 : vector<16xf32> to vector<16x1xf32>
    %cst_95 = arith.constant 3.200000e+01 : f32
    %264 = vector.broadcast %cst_95 : f32 to vector<16x1xf32>
    %265 = arith.divf %263, %264 : vector<16x1xf32>
    %266 = vector.broadcast %258 : vector<16x1xf32> to vector<16x32xf32>
    %267 = arith.subf %254, %266 : vector<16x32xf32>
    %cst_96 = arith.constant 9.99999974E-6 : f32
    %268 = vector.broadcast %cst_96 : f32 to vector<16x1xf32>
    %269 = arith.addf %265, %268 : vector<16x1xf32>
    %270 = math.rsqrt %269 : vector<16x1xf32>
    %271 = vector.broadcast %270 : vector<16x1xf32> to vector<16x32xf32>
    %272 = arith.mulf %267, %271 : vector<16x32xf32>
    %c0_97 = arith.constant 0 : index
    %c0_98 = arith.constant 0 : index
    %c0_99 = arith.constant 0 : index
    %273 = vector.load %arg13[%c0_97, %c0_98, %c0_99] : memref<1x1x32xf32, #tpu.memory_space<vmem>>, vector<1x1x32xf32>
    %274 = vector.shape_cast %273 : vector<1x1x32xf32> to vector<1x32xf32>
    %275 = vector.broadcast %274 : vector<1x32xf32> to vector<16x32xf32>
    %276 = arith.mulf %272, %275 : vector<16x32xf32>
    %c0_100 = arith.constant 0 : index
    %c0_101 = arith.constant 0 : index
    %c0_102 = arith.constant 0 : index
    %277 = vector.load %arg14[%c0_100, %c0_101, %c0_102] : memref<1x1x32xf32, #tpu.memory_space<vmem>>, vector<1x1x32xf32>
    %278 = vector.shape_cast %277 : vector<1x1x32xf32> to vector<1x32xf32>
    %279 = vector.broadcast %278 : vector<1x32xf32> to vector<16x32xf32>
    %280 = arith.addf %276, %279 : vector<16x32xf32>
    %c0_103 = arith.constant 0 : index
    %c0_104 = arith.constant 0 : index
    %281 = vector.load %arg15[%c0_103, %c0_104] : memref<16x32xf32, #tpu.memory_space<vmem>>, vector<16x32xf32>
    tpu.vector_store %arg15[%c0_103, %c0_104], %280 {strides = array<i32>} : memref<16x32xf32, #tpu.memory_space<vmem>>, vector<16x32xf32>,
    return
  }
  func.func @transform_0(%arg0: i32) -> (i32, i32) {
    %c0_i32 = arith.constant 0 : i32
    %c0_i32_0 = arith.constant 0 : i32
    %c0_i32_1 = arith.constant 0 : i32
    return %c0_i32, %c0_i32_0 : i32, i32
  }
  func.func @transform_1(%arg0: i32) -> (i32, i32) {
    %c0_i32 = arith.constant 0 : i32
    %c0_i32_0 = arith.constant 0 : i32
    %c0_i32_1 = arith.constant 0 : i32
    return %c0_i32, %c0_i32_0 : i32, i32
  }
  func.func @transform_2(%arg0: i32) -> (i32, i32, i32) {
    %c0_i32 = arith.constant 0 : i32
    %c0_i32_0 = arith.constant 0 : i32
    %c0_i32_1 = arith.constant 0 : i32
    return %arg0, %c0_i32, %c0_i32_0 : i32, i32, i32
  }
  func.func @transform_3(%arg0: i32) -> (i32, i32, i32) {
    %c0_i32 = arith.constant 0 : i32
    %c0_i32_0 = arith.constant 0 : i32
    %c0_i32_1 = arith.constant 0 : i32
    return %arg0, %c0_i32, %c0_i32_0 : i32, i32, i32
  }
  func.func @transform_4(%arg0: i32) -> (i32, i32, i32) {
    %c0_i32 = arith.constant 0 : i32
    %c0_i32_0 = arith.constant 0 : i32
    %c0_i32_1 = arith.constant 0 : i32
    return %arg0, %c0_i32, %c0_i32_0 : i32, i32, i32
  }
  func.func @transform_5(%arg0: i32) -> (i32, i32, i32) {
    %c0_i32 = arith.constant 0 : i32
    %c0_i32_0 = arith.constant 0 : i32
    %c0_i32_1 = arith.constant 0 : i32
    return %arg0, %c0_i32, %c0_i32_0 : i32, i32, i32
  }
  func.func @transform_6(%arg0: i32) -> (i32, i32, i32) {
    %c0_i32 = arith.constant 0 : i32
    %c0_i32_0 = arith.constant 0 : i32
    %c0_i32_1 = arith.constant 0 : i32
    return %arg0, %c0_i32, %c0_i32_0 : i32, i32, i32
  }
  func.func @transform_7(%arg0: i32) -> (i32, i32, i32) {
    %c0_i32 = arith.constant 0 : i32
    %c0_i32_0 = arith.constant 0 : i32
    %c0_i32_1 = arith.constant 0 : i32
    return %arg0, %c0_i32, %c0_i32_0 : i32, i32, i32
  }
  func.func @transform_8(%arg0: i32) -> (i32, i32, i32) {
    %c0_i32 = arith.constant 0 : i32
    %c0_i32_0 = arith.constant 0 : i32
    %c0_i32_1 = arith.constant 0 : i32
    return %arg0, %c0_i32, %c0_i32_0 : i32, i32, i32
  }
  func.func @transform_9(%arg0: i32) -> (i32, i32, i32) {
    %c0_i32 = arith.constant 0 : i32
    %c0_i32_0 = arith.constant 0 : i32
    %c0_i32_1 = arith.constant 0 : i32
    return %arg0, %c0_i32, %c0_i32_0 : i32, i32, i32
  }
  func.func @transform_10(%arg0: i32) -> (i32, i32, i32) {
    %c0_i32 = arith.constant 0 : i32
    %c0_i32_0 = arith.constant 0 : i32
    %c0_i32_1 = arith.constant 0 : i32
    return %arg0, %c0_i32, %c0_i32_0 : i32, i32, i32
  }
  func.func @transform_11(%arg0: i32) -> (i32, i32, i32) {
    %c0_i32 = arith.constant 0 : i32
    %c0_i32_0 = arith.constant 0 : i32
    %c0_i32_1 = arith.constant 0 : i32
    return %arg0, %c0_i32, %c0_i32_0 : i32, i32, i32
  }
  func.func @transform_12(%arg0: i32) -> (i32, i32, i32) {
    %c0_i32 = arith.constant 0 : i32
    %c0_i32_0 = arith.constant 0 : i32
    %c0_i32_1 = arith.constant 0 : i32
    return %arg0, %c0_i32, %c0_i32_0 : i32, i32, i32
  }
  func.func @transform_13(%arg0: i32) -> (i32, i32, i32) {
    %c0_i32 = arith.constant 0 : i32
    %c0_i32_0 = arith.constant 0 : i32
    %c0_i32_1 = arith.constant 0 : i32
    return %arg0, %c0_i32, %c0_i32_0 : i32, i32, i32
  }
  func.func @transform_14(%arg0: i32) -> (i32, i32) {
    %c0_i32 = arith.constant 0 : i32
    %c0_i32_0 = arith.constant 0 : i32
    %c0_i32_1 = arith.constant 0 : i32
    return %c0_i32, %c0_i32_0 : i32, i32
  }
}

</mosaic_0001>

<bundles_post_ra>
// kernel: tpu_custom_call.1
= control target key start
LH: loop header
LB: loop body
LE: loop exit
PB: predicated region body
PF: predicated region fallthrough
CT: control target
= control target key end

     0   :  { %s2892_s0 = inlined_call_operand.hbm [shape: f32[16,32], index: 0, kind: input, shape index: {}]   ;;  %s2893_s1 = inlined_call_operand.hbm [shape: f32[16,32], index: 1, kind: input, shape index: {}]   ;;  %s2894_s2 = inlined_call_operand.vmem [shape: f32[2,32,96], index: 2, kind: input, shape index: {}]   ;;  %s2895_s3 = inlined_call_operand.vmem [shape: f32[2,1,96], index: 3, kind: input, shape index: {}]   ;;  %s2896_s4 = inlined_call_operand.vmem [shape: f32[2,32,32], index: 4, kind: input, shape index: {}]   ;;  %s2897_s5 = inlined_call_operand.hbm [shape: f32[2,1,32], index: 5, kind: input, shape index: {}]   ;;  %s2898_s6 = inlined_call_operand.vmem [shape: f32[2,1,32], index: 6, kind: input, shape index: {}]   ;;  %s2899_s7 = inlined_call_operand.hbm [shape: f32[2,1,32], index: 7, kind: input, shape index: {}]   ;;  %s2900_s8 = inlined_call_operand.vmem [shape: f32[2,32,64], index: 8, kind: input, shape index: {}]   ;;  %s2901_s9 = inlined_call_operand.vmem [shape: f32[2,1,64], index: 9, kind: input, shape index: {}]   ;;  %s2902_s10 = inlined_call_operand.vmem [shape: f32[2,64,32], index: 10, kind: input, shape index: {}]   ;;  %s2903_s11 = inlined_call_operand.vmem [shape: f32[2,1,32], index: 11, kind: input, shape index: {}]   ;;  %s2904_s12 = inlined_call_operand.vmem [shape: f32[2,1,32], index: 12, kind: input, shape index: {}]   ;;  %s2905_s13 = inlined_call_operand.hbm [shape: f32[2,1,32], index: 13, kind: input, shape index: {}]   ;;  %s2906_s14 = inlined_call_operand.hbm [shape: f32[16,32], index: 14, kind: output, shape index: {}]  }
   0x1   :  { %2912 = sst [smem:[#allocation18_spill]] %s2892_s0 }
   0x2   :  { %2913 = sst [smem:[#allocation19_spill]] %s2893_s1 }
   0x3   :  { %2914 = sst [smem:[#allocation20_spill]] %s2894_s2 }
   0x4   :  { %2915 = sst [smem:[#allocation21_spill]] %s2896_s4 }
   0x5   :  { %2916 = sst [smem:[#allocation22_spill]] %s2897_s5 }
   0x6   :  { %2917 = sst [smem:[#allocation23_spill]] %s2901_s9 }
   0x7   :  { %2918 = sst [smem:[#allocation24_spill]] %s2902_s10 }
   0x8   :  { %2919 = sst [smem:[#allocation25_spill]] %s2903_s11 }
   0x9   :  { %2920 = sst [smem:[#allocation26_spill]] %s2904_s12 }
   0xa   :  { %2921 = sst [smem:[#allocation27_spill]] %s2906_s14 }
   0xb   :  { %19 = vsyncpa [#allocation3], 0 }
   0xc   :  { %20 = vsyncpa [#allocation6], 0 }
   0xd   :  { %21 = vsyncpa [#allocation4], 0  ;;  %s2445_s29 = smov 0   ;;  %s2447_s30 = smov 0  }
   0xe   :  { %s2449_s15 = smov 0   ;;  %s2451_s16 = smov 0  }
   0xf LB: > { %2922 = sst [smem:[#allocation15_spill]] %s2344_s15  ;;  %s2464_s17 = sadd.s32 4294967295, %s2348_s16   ;;  %s2348_s16 = sphi %s2451_s16, %s2948_s16   ;;  %s2344_s15 = sphi %s2449_s15, %s2950_s15   ;;  %s2340_s30 = sphi %s2447_s30, %s2952_s30   ;;  %s2336_s29 = sphi %s2445_s29, %s2951_s29  }
  0x10   : > { %p167_p0 = scmp.ne.s32.totalorder %s2340_s30, %s2336_s29  ;;  %p168_p1 = scmp.eq.s32.totalorder %s2464_s17, 0 }
  0x11   : > { %p1914_p2 = scmp.ge.s32.totalorder %s2348_s16, 1  ;;  %p407_p3 = scmp.lt.s32.totalorder %s2348_s16, 3 }
  0x12   : > { %p2473_p5 = por %p168_p1, %p167_p0  ;;  %s2924_s0 = sld [smem:[#allocation18_spill]] }
  0x13   : > { %p2480_p6 = pnand %p1914_p2, %p407_p3  ;;  %s2350_s23 = smov [#allocation2]  }
  0x14   : > { %s420_s24 = sshll.u32 %s2350_s23, 4  ;;  %s2493_s26 = sadd.s32 1, %s2348_s16   ;;  %s421_s24 = int_to_ptr.vmem [resolvable:$true] %s420_s24 }
  0x15   : > { %p1998_p7 = pneg %p2480_p6  ;;  %2927 = sst [smem:[#allocation16_spill]] %s2493_s26 }
  0x16   : > { %s2907_s27 = smov 128   ;;  %s2908_s28 = smov 8  }
  0x17   : > { %p2488_p8 = pnand %p1998_p7, %p168_p1  ;;  %s151_s29 = ssub.s32 %s2348_s16, %s2493_s26 }
  0x18   : > { %s418_s21 = sshll.u32 %s2924_s0, 4  ;;  %s154_s19 = sadd.s32 1, %s2344_s15  ;;  %s419_s21 = int_to_ptr.hbm [resolvable:$true] %s418_s21 }
  0x19   : > { %2001 = dma.hbm_to_vmem [thread:$0]  (!%p2488_p8), %s419_s21, 256, %s421_s24, [#allocation3], %s2907_s27, %s2907_s27, %s2908_s28  }
  0x1a   : > { %p152_p9 = scmp.eq.s32.totalorder %s151_s29, 0  ;;  %p161_p10 = scmp.ne.s32.totalorder %s2344_s15, %s2340_s30 }
  0x1b   : > { %p162_p11 = scmp.eq.s32.totalorder %s2348_s16, 0  ;;  %p2017_p12 = scmp.lt.s32.totalorder %s2348_s16, 2 }
  0x1c   : > { %s2508_s20 = scalar_select %p152_p9, %s2344_s15, %s154_s19  }
  0x1d   : > { %p163_p13 = por %p162_p11, %p161_p10  ;;  %s470_s23 = sand.u32 1, %s2348_s16  }
  0x1e   : > { %2928 = sst [smem:[#allocation17_spill]] %s2508_s20  ;;  %s2512_s0 = sand.u32 1, %s2344_s15  }
  0x1f   : > { %s2929_s5 = sld [smem:[#allocation22_spill]]  ;;  %s473_s24 = scalar_lea.vmem [#allocation7], %s2512_s0 }
  0x20   : > { %s480_s27 = sshll.u32 %s473_s24, 4  ;;  %p2519_p0 = pnand %p2017_p12, %p163_p13  ;;  %s481_s27 = int_to_ptr.vmem [resolvable:$true] %s480_s27 }
  0x21   : > { %s499_s20 = scalar_lea.hbm %s2899_s7, %s2348_s16  ;;  %s496_s15 = scalar_lea.vmem [#allocation8], %s2512_s0 }
  0x22   : > { %s2528_s12 = sshll.u32 %s496_s15, 4  ;;  %s2530_s14 = sshll.u32 %s499_s20, 4  ;;  %s502_s14 = int_to_ptr.hbm [resolvable:$true] %s2530_s14  ;;  %s504_s12 = int_to_ptr.vmem [resolvable:$true] %s2528_s12 }
  0x23   : > { %p2158_p3 = pneg %p2519_p0 }
  0x25   : > { %s476_s11 = scalar_lea.hbm %s2929_s5, %s2348_s16  ;;  %s2161_s10 = scalar_lea.hbm %s2929_s5, 2 }
  0x26   : > { %s478_s21 = sshll.u32 %s476_s11, 4  ;;  %s2532_s11 = scalar_lea.sflag [#allocation3], %s470_s23  ;;  %s479_s21 = int_to_ptr.hbm [resolvable:$true] %s478_s21 }
  0x27   : > { %s2154_s24 = sshra.s32 %s479_s21, 4  ;;  %s2155_s24 = int_to_ptr.hbm [resolvable:$true] %s2154_s24 }
  0x28   : > { %s2156_s26 = scalar_lea.hbm %s2155_s24, 1  ;;  %p2162_p10 = scmp.lt.s32.totalorder %s2155_s24, %s2929_s5 }
  0x29   : > { %p2157_p2 = scmp.ne.s32.totalorder %s2155_s24, %s2156_s26  ;;  %p2163_p11 = scmp.lt.s32.totalorder %s2161_s10, %s2156_s26 }
  0x2b   : > { %p2159_p7 = pnand %p2158_p3, %p2157_p2  ;;  %p2164_p12 = por %p2163_p11, %p2162_p10 }
  0x2d   : > { %p2160_p9 = pneg %p2159_p7 }
  0x2f   : > { %p2165_p13 = pnand %p2164_p12, %p2160_p9 }
  0x31   : > { %2168 = shalt.err (!%p2165_p13)
}
  0x32   : > { %2008 = dma.hbm_to_vmem [thread:$0]  (!%p2519_p0), %s479_s21, 16, %s481_s27, %s2532_s11  }
  0x33   : > { %s2184_s20 = sshra.s32 %s502_s14, 4  ;;  %s2191_s26 = scalar_lea.hbm %s2899_s7, 2  ;;  %s2185_s20 = int_to_ptr.hbm [resolvable:$true] %s2184_s20 }
  0x34   : > { %s2186_s23 = scalar_lea.hbm %s2185_s20, 1  ;;  %p2192_p9 = scmp.lt.s32.totalorder %s2185_s20, %s2899_s7 }
  0x35   : > { %p2187_p2 = scmp.ne.s32.totalorder %s2185_s20, %s2186_s23  ;;  %p2193_p10 = scmp.lt.s32.totalorder %s2191_s26, %s2186_s23 }
  0x37   : > { %p2189_p7 = pnand %p2187_p2, %p2158_p3  ;;  %p2194_p11 = por %p2193_p10, %p2192_p9 }
  0x39   : > { %p2190_p4 = pneg %p2189_p7 }
  0x3b   : > { %p2195_p12 = pnand %p2194_p11, %p2190_p4 }
  0x3d   : > { %2198 = shalt.err (!%p2195_p12)
}
  0x3e   : > { %2011 = dma.hbm_to_vmem [thread:$0]  (!%p2519_p0), %s502_s14, 16, %s504_s12, %s2532_s11  }
  0x3f   : > { %s2931_s1 = sld [smem:[#allocation19_spill]]  ;;  %s2353_s15 = smov [#allocation5]  }
  0x40   : > { %s434_s9 = sshll.u32 %s2353_s15, 4  ;;  %s2932_s20 = smov 8   ;;  %s435_s9 = int_to_ptr.vmem [resolvable:$true] %s434_s9 }
  0x41   : > { %s2933_s23 = smov 128   ;;  %s550_s24 = scalar_lea.hbm %s2905_s13, %s2348_s16 }
  0x42   : > { %s547_s28 = scalar_lea.vmem [#allocation9], %s2512_s0  ;;  %s552_s14 = sshll.u32 %s550_s24, 4  ;;  %s553_s14 = int_to_ptr.hbm [resolvable:$true] %s552_s14 }
  0x43   : > { %s554_s12 = sshll.u32 %s547_s28, 4  ;;  %s2244_s27 = sshra.s32 %s553_s14, 4  ;;  %s555_s12 = int_to_ptr.vmem [resolvable:$true] %s554_s12  ;;  %s2245_s27 = int_to_ptr.hbm [resolvable:$true] %s2244_s27 }
  0x44   : > { %s2246_s21 = scalar_lea.hbm %s2245_s27, 1 }
  0x45   : > { %s432_s19 = sshll.u32 %s2931_s1, 4  ;;  %p2247_p4 = scmp.ne.s32.totalorder %s2245_s27, %s2246_s21  ;;  %s433_s19 = int_to_ptr.hbm [resolvable:$true] %s432_s19 }
  0x46   : > { %2004 = dma.hbm_to_vmem [thread:$0]  (!%p2488_p8), %s433_s19, 256, %s435_s9, [#allocation6], %s2933_s23, %s2933_s23, %s2932_s20  }
  0x47   : > { %p2249_p13 = pnand %p2247_p4, %p2158_p3  ;;  %s2251_s19 = scalar_lea.hbm %s2905_s13, 2 }
  0x48   : > { %p2252_p8 = scmp.lt.s32.totalorder %s2245_s27, %s2905_s13  ;;  %p2253_p7 = scmp.lt.s32.totalorder %s2251_s19, %s2246_s21 }
  0x49   : > { %p2250_p2 = pneg %p2249_p13 }
  0x4a   : > { %p2254_p9 = por %p2253_p7, %p2252_p8 }
  0x4c   : > { %p2255_p10 = pnand %p2254_p9, %p2250_p2 }
  0x4e   : > { %2258 = shalt.err (!%p2255_p10)
}
  0x4f   : > { %2014 = dma.hbm_to_vmem [thread:$0]  (!%p2519_p0), %s553_s14, 16, %s555_s12, %s2532_s11  }
  0x50   : > { %563 = sbr.rel (%p2480_p6) target bundleno = 3283 (0xcd3), region = 76 }
  0x55   : > { %2319 = dma.done.wait (%p168_p1), [#allocation3], 256  }
  0x56   : > { %2321 = vsyncadd (%p168_p1), [#allocation3], 4294967040 }
  0x57   : > { %2323 = dma.done.wait (%p168_p1), [#allocation6], 256  }
  0x58   : > { %2325 = vsyncadd (%p168_p1), [#allocation6], 4294967040  ;;  %s575_s0 = sand.u32 1, %s2464_s17   ;;  %s2599_s16 = sand.u32 1, %s2340_s30  }
  0x59   : > { %s576_s22 = scalar_lea.sflag [#allocation3], %s575_s0 }
  0x5a   : > { %2327 = dma.done.wait (%p2473_p5), %s576_s22, 48  }
  0x5b   : > { %2329 = vsyncadd (%p2473_p5), %s576_s22, 4294967248  ;;  %p679_p6 = scmp.lt.s32.totalorder %s2464_s17, 1  ;;  %s2934_s2 = sld [smem:[#allocation20_spill]] }
  0x5c   : > { %s2935_s4 = sld [smem:[#allocation21_spill]]  ;;  %s596_s20 = scalar_lea.vmem [#allocation9], %s2599_s16 }
  0x5d   : > { %s2608_s11 = scalar_select %p679_p6, %s2464_s17, 1 }
  0x5e   : > { %s2936_s26 = sld [smem:[#allocation23_spill]]  ;;  %p2940_p1 = scmp.ne.s32.totalorder %s2464_s17, 0 }
  0x5f   : > { %s1972_s23 = sshll.u32 %s2608_s11, 5  ;;  %s1975_s24 = sshll.u32 %s2608_s11, 6 }
  0x60   : > { %s2630_s0 = scalar_lea.vmem %s2900_s8, %s1972_s23  ;;  %s2937_s1 = sld [smem:[#allocation24_spill]] }
  0x61   : > { %s683_s12 = scalar_lea.vmem %s2934_s2, %s1972_s23  ;;  %s2939_s5 = sld [smem:[#allocation26_spill]] }
  0x62   : > { %s2621_s21 = scalar_lea.vmem %s2935_s4, %s1972_s23  ;;  %s2938_s4 = sld [smem:[#allocation25_spill]] }
  0x63   : > { %s587_s23 = scalar_lea.vmem [#allocation8], %s2599_s16 }
  0x64   : > { %s702_s29 = scalar_lea.vmem %s2936_s26, %s2608_s11  ;;  %717 = sbr.rel (%p2940_p1) target bundleno = 110 (0x6e), region = 100 }
  0x66   : > { %s2640_s14 = scalar_lea.vmem %s2937_s1, %s1975_s24 }
  0x67   : > { %s713_s9 = scalar_lea.vmem %s2939_s5, %s2608_s11 }
  0x68   : > { %s710_s25 = scalar_lea.vmem %s2938_s4, %s2608_s11 }
  0x69   : > { %v718_v0 = vld [vmem:[#allocation2] sm:$0xff]  ;;  %v720_v1 = vld [vmem:[#allocation5] sm:$0xff]  ;;  %vm724_vm0 = vcmask 261120   ;;  %v719_v2 = vld [vmem:[#allocation2 + $0x8] sm:$0xff] }
  0x6a   : > { %v722_v3 = vadd.f32 %v720_v1, %v718_v0  ;;  %v721_v4 = vld [vmem:[#allocation5 + $0x8] sm:$0xff] }
  0x6b   : > { %v723_v5 = vadd.f32 %v721_v4, %v719_v2 }
  0x6c   : > { %725 = vst.msk [vmem:[#allocation10] sm:$0xff] %vm724_vm0, %v722_v3 }
  0x6d   : > { %726 = vst.msk [vmem:[#allocation10 + $0x8] sm:$0xff] %vm724_vm0, %v723_v5 }
  0x6e PF: > { %v732_v6 = vld [vmem:[%s683_s12 + $0x18] sm:$0xff]  ;;  %v731_v7 = vld [vmem:[%s683_s12 + $0x10] sm:$0xff]  ;;  %v730_v8 = vld [vmem:[%s683_s12 + $0x8] sm:$0xff]  ;;  %vm737_vm1 = vcmask 261120   ;;  %s2941_s4 = scalar_lea.vmem %s2895_s3, %s2608_s11  ;;  %s2354_s5 = smov 120   ;;  %vm780_vm2 = vcmask 64512   ;;  %v767_v18 = vlaneseq }
  0x6f   : > { %756 = vmatpush.msra.mxu0 %v732_v6  ;;  %1976 = vmatpush.msra.mxu2 %v732_v6  ;;  %v729_v9 = vld [vmem:[%s683_s12] sm:$0xff]  ;;  %s2355_s18 = smov 96   ;;  %s2356_s12 = smov 88   ;;  %v2357_v22 = vmov -1e+30   ;;  %v774_v54 = vld [vmem:[%s2621_s21 + $0x8] sm:$0xff] }
  0x70   : > { %v2074_v11 = vld [vmem:[%s2941_s4] ss:$0 sm:$0xff]  ;;  %v768_v19 = vshrl.u32 %v767_v18, 7  ;;  %v770_v20 = vand.u32 127, %v767_v18  ;;  %s2358_s19 = smov 112   ;;  %s2359_s22 = smov 72  }
  0x71   : > { %757 = vmatpush.msra.mxu0 %v731_v7  ;;  %1977 = vmatpush.msra.mxu2 %v731_v7  ;;  %s2360_s10 = smov 64   ;;  %s2361_s26 = smov 56   ;;  %v773_v53 = vld [vmem:[%s2621_s21] sm:$0xff]  ;;  %v775_v57 = vld [vmem:[%s2621_s21 + $0x10] sm:$0xff]  ;;  %vm1622_vm8 = vcmask 523264  }
  0x72   : > { %vm771_vm3 = vcmp.ge.s32.totalorder %v768_v19, %v770_v20  ;;  %s2362_s24 = smov 80   ;;  %s2363_s28 = smov 48  }
  0x73   : > { %758 = vmatpush.msra.mxu0 %v730_v8  ;;  %v2654_v10 = vld [vmem:[#allocation10] sm:$0xff]  ;;  %1978 = vmatpush.msra.mxu2 %v730_v8  ;;  %v2680_v23 = vsel %vm771_vm3, 0.0, %v2357_v22  ;;  %s2364_s27 = smov 104   ;;  %s2365_s15 = smov 40  }
  0x74   : > { %v2671_v14 = vld [vmem:[#allocation10 + $0x8] sm:$0xff]  ;;  %s2943_s2 = scalar_lea.vmem %s2898_s6, %s2608_s11  ;;  %p2020_p5 = scmp.eq.s32.totalorder %s2464_s17, 1 }
  0x75   : > { %759 = vmatpush.msra.mxu0 %v729_v9  ;;  %1979 = vmatpush.msra.mxu2 %v729_v9 }
  0x76   : > { %1930 = vmatmul.msk.f32.vlgmr.msra.gmra.mxu0 %vm737_vm1, %v2654_v10  ;;  %1931 = vmatmul.msk.f32.vlgmr.msra.gmra.mxu2 %vm737_vm1, %v2671_v14 }
  0xf3   : > { %v761_v12 = vpop.f32.mrf.mxu0 }
  0xf4   : > { %v2663_v13 = vadd.f32 %v2074_v11, %v761_v12 }
  0xf6   : > { %844 = vrot.lane.b32.xlu1 %v2663_v13, %s2354_s5  ;;  %778 = vrot.lane.b32.xlu0 %v2663_v13, %s2355_s18 }
  0xf9   : > { %v764_v31 = vpop.f32.mrf.mxu2 }
  0xfa   : > { %v2688_v32 = vadd.f32 %v2074_v11, %v764_v31 }
  0xfe   : > { %846 = vrot.lane.b32.xlu0 %v2663_v13, %s2356_s12 }
 0x168   : > { %v779_v15 = vpop.permute.xlu0 %778  ;;  %v845_v17 = vpop.permute.xlu1 %844 }
 0x169   : > { %1932 = vmatpush.xpose.msk.msra.mxu1 %vm780_vm2, %v779_v15 }
 0x16c   : > { %1933 = vmatmul.msk.f32.vlgmr.msra.gmra.mxu1 %vm780_vm2, %v2663_v13 }
 0x16d   : > { %929 = vmatpush.msrb.mxu1 %v774_v54 }
 0x170   : > { %v847_v16 = vpop.permute.xlu0 %846 }
 0x171   : > { %1935 = vmatpush.xpose.msk.msra.mxu3 %vm780_vm2, %v847_v16 }
 0x174   : > { %1936 = vmatmul.msk.f32.vlgmr.msra.gmra.mxu3 %vm780_vm2, %v845_v17 }
 0x175   : > { %952 = vmatpush.msrb.mxu3 %v773_v53 }
 0x177   : > { %1042 = vmatpush.msra.mxu3 %v775_v57 }
 0x1e9   : > { %v802_v21 = vpop.f32.mrf.mxu1 }
 0x1ea   : > { %v805_v24 = vmul.f32 0.35355338, %v802_v21 }
 0x1ec   : > { %v806_v25 = vadd.f32 %v805_v24, %v2680_v23 }
 0x1ee   : > { %v807_v26 = vsel %vm780_vm2, %v806_v25, -inf }
 0x1ef   : > { %808 = vmax.xlane.f32.xlu1 %v807_v26 }
 0x1f7   : > { %v869_v27 = vpop.f32.mrf.mxu3 }
 0x1f8   : > { %v872_v28 = vmul.f32 0.35355338, %v869_v27 }
 0x1fa   : > { %v873_v29 = vadd.f32 %v872_v28, %v2680_v23 }
 0x1fc   : > { %v874_v30 = vsel %vm780_vm2, %v873_v29, -inf }
 0x1fd   : > { %875 = vmax.xlane.f32.xlu2 %v874_v30 }
 0x208   : > { %957 = vrot.lane.b32.xlu1 %v2663_v13, %s2358_s19 }
 0x210   : > { %1140 = vrot.lane.b32.xlu1 %v2688_v32, %s2355_s18 }
 0x218   : > { %1050 = vrot.lane.b32.xlu1 %v2663_v13, %s2359_s22 }
 0x262   : > { %v809_v33 = vpop.xlane.xlu1 %808 }
 0x263   : > { %v810_v34 = vsub.f32 %v806_v25, %v809_v33 }
 0x265   : > { %v811_v35 = vmul.f32 1.442695, %v810_v34 }
 0x267   : > { %2082 = vpow2.f32 %v811_v35 }
 0x26d   : > { %v2083_v36 = vpop.eup %2082 }
 0x26e   : > { %v813_v37 = vsel %vm780_vm2, %v2083_v36, 0.0 }
 0x26f   : > { %814 = vadd.xlane.f32.xlu2 %v813_v37 }
 0x270   : > { %v876_v38 = vpop.xlane.xlu2 %875 }
 0x271   : > { %v877_v39 = vsub.f32 %v873_v29, %v876_v38 }
 0x273   : > { %v878_v40 = vmul.f32 1.442695, %v877_v39 }
 0x275   : > { %2084 = vpow2.f32 %v878_v40 }
 0x27a   : > { %v958_v52 = vpop.permute.xlu1 %957 }
 0x27b   : > { %v2085_v41 = vpop.eup %2084 }
 0x27c   : > { %v880_v42 = vsel %vm780_vm2, %v2085_v41, 0.0 }
 0x27d   : > { %881 = vadd.xlane.f32.xlu0 %v880_v42 }
 0x282   : > { %v1141_v58 = vpop.permute.xlu1 %1140 }
 0x287   : > { %818 = vrot.lane.b32.xlu2 %v2663_v13, %s2360_s10 }
 0x28a   : > { %v1051_v9 = vpop.permute.xlu1 %1050 }
 0x28f   : > { %885 = vrot.lane.b32.xlu2 %v2663_v13, %s2361_s26 }
 0x297   : > { %959 = vrot.lane.b32.xlu2 %v2663_v13, %s2362_s24 }
 0x2e2   : > { %v815_v43 = vpop.xlane.xlu2 %814 }
 0x2e3   : > { %2086 = vrcp.f32 %v815_v43 }
 0x2e9   : > { %v2087_v44 = vpop.eup %2086 }
 0x2ea   : > { %v819_v45 = vpop.permute.xlu2 %818  ;;  %v817_v46 = vmul.f32 %v2087_v44, %v2083_v36 }
 0x2eb   : > { %839 = vmatpush.msrb.mxu2 %v819_v45 }
 0x2ec   : > { %1934 = vmatmul.msk.f32.vlgmr.msrb.gmra.mxu2 %vm780_vm2, %v817_v46 }
 0x2f0   : > { %v882_v47 = vpop.xlane.xlu0 %881 }
 0x2f1   : > { %2088 = vrcp.f32 %v882_v47 }
 0x2f2   : > { %v886_v48 = vpop.permute.xlu2 %885 }
 0x2f3   : > { %906 = vmatpush.msra.mxu2 %v886_v48 }
 0x2f7   : > { %v2089_v49 = vpop.eup %2088 }
 0x2f8   : > { %v884_v50 = vmul.f32 %v2089_v49, %v2085_v41  ;;  %v2761_v49 = vld [vmem:[%s2621_s21 + $0x18] sm:$0xff]  ;;  %s2942_s21 = scalar_lea.vmem [#allocation7], %s2599_s16  ;;  %s2367_s16 = smov [#allocation10]  }
 0x2f9   : > { %s1717_s11 = sshll.u32 %s2367_s16, 4  ;;  %s1718_s11 = int_to_ptr.vmem [resolvable:$true] %s1717_s11 }
 0x2fa   : > { %1937 = vmatmul.msk.f32.vlgmr.msra.gmra.mxu2 %vm780_vm2, %v884_v50  ;;  %v960_v51 = vpop.permute.xlu2 %959 }
 0x2fb   : > { %1940 = vmatpush.xpose.msk.msrb.mxu2 %vm780_vm2, %v960_v51 }
 0x302   : > { %1941 = vmatmul.msk.f32.vlgmr.msrb.gmra.mxu2 %vm780_vm2, %v958_v52 }
 0x36f   : > { %v841_v55 = vpop.f32.mrf.mxu2 }
 0x370   : > { %1939 = vmatmul.msk.f32.vlgmr.msrb.gmra.mxu3 %vm780_vm2, %v841_v55 }
 0x371   : > { %1948 = vmatpush.xpose.msk.msrb.mxu3 %vm780_vm2, %v1141_v58 }
 0x37d   : > { %v908_v56 = vpop.f32.mrf.mxu2 }
 0x37e   : > { %1938 = vmatmul.msk.f32.vlgmr.msrb.gmra.mxu1 %vm780_vm2, %v908_v56 }
 0x385   : > { %v982_v59 = vpop.f32.mrf.mxu2 }
 0x386   : > { %v985_v60 = vmul.f32 0.35355338, %v982_v59 }
 0x388   : > { %v986_v61 = vadd.f32 %v985_v60, %v2680_v23 }
 0x38a   : > { %v987_v62 = vsel %vm780_vm2, %v986_v61, -inf }
 0x38b   : > { %988 = vmax.xlane.f32.xlu2 %v987_v62 }
 0x3a3   : > { %1179 = vrot.lane.b32.xlu2 %v2688_v32, %s2360_s10 }
 0x3f3   : > { %v2733_v20 = vpop.f32.mrf.mxu3 }
 0x3fb   : > { %v2724_v12 = vpop.f32.mrf.mxu1 }
 0x3fe   : > { %v989_v63 = vpop.xlane.xlu2 %988 }
 0x3ff   : > { %v990_v0 = vsub.f32 %v986_v61, %v989_v63 }
 0x401   : > { %v991_v1 = vmul.f32 1.442695, %v990_v0 }
 0x403   : > { %2090 = vpow2.f32 %v991_v1 }
 0x406   : > { %v1180_v2 = vpop.permute.xlu2 %1179 }
 0x407   : > { %1200 = vmatpush.msrb.mxu0 %v1180_v2 }
 0x409   : > { %1313 = vmatpush.msra.mxu0 %v773_v53  ;;  %v2091_v3 = vpop.eup %2090 }
 0x40a   : > { %v993_v4 = vsel %vm780_vm2, %v2091_v3, 0.0 }
 0x40b   : > { %994 = vadd.xlane.f32.xlu0 %v993_v4 }
 0x41f   : > { %998 = vrot.lane.b32.xlu0 %v2663_v13, %s2363_s28 }
 0x427   : > { %1048 = vrot.lane.b32.xlu0 %v2663_v13, %s2364_s27 }
 0x47e   : > { %v995_v5 = vpop.xlane.xlu0 %994 }
 0x47f   : > { %2092 = vrcp.f32 %v995_v5 }
 0x485   : > { %v2093_v6 = vpop.eup %2092 }
 0x486   : > { %v997_v7 = vmul.f32 %v2093_v6, %v2091_v3 }
 0x491   : > { %v999_v8 = vpop.permute.xlu0 %998 }
 0x492   : > { %1019 = vmatpush.msra.mxu1 %v999_v8 }
 0x493   : > { %1942 = vmatmul.msk.f32.vlgmr.msra.gmra.mxu1 %vm780_vm2, %v997_v7 }
 0x494   : > { %1944 = vmatpush.xpose.msk.msrb.mxu1 %vm780_vm2, %v1051_v9 }
 0x498   : > { %1133 = vmatpush.msra.mxu1 %v2761_v49 }
 0x499   : > { %v1049_v11 = vpop.permute.xlu0 %1048 }
 0x49b   : > { %1945 = vmatmul.msk.f32.vlgmr.msrb.gmra.mxu1 %vm780_vm2, %v1049_v11 }
 0x510   : > { %v1021_v15 = vpop.f32.mrf.mxu1 }
 0x511   : > { %1943 = vmatmul.msk.f32.vlgmr.msra.gmra.mxu3 %vm780_vm2, %v1021_v15 }
 0x512   : > { %1290 = vmatpush.msra.mxu3 %v774_v54 }
 0x518   : > { %v1073_v16 = vpop.f32.mrf.mxu1 }
 0x519   : > { %v1076_v17 = vmul.f32 0.35355338, %v1073_v16  ;;  %1949 = vmatmul.msk.f32.vlgmr.msrb.gmra.mxu3 %vm780_vm2, %v2688_v32 }
 0x51a   : > { %1403 = vmatpush.msrb.mxu3 %v775_v57 }
 0x51b   : > { %v1077_v18 = vadd.f32 %v1076_v17, %v2680_v23 }
 0x51d   : > { %v1078_v19 = vsel %vm780_vm2, %v1077_v18, -inf }
 0x51e   : > { %1079 = vmax.xlane.f32.xlu2 %v1078_v19  ;;  %v2786_v19 = vld [vmem:[%s2942_s21] ss:$0 sm:$0xff] }
 0x536   : > { %1320 = vrot.lane.b32.xlu2 %v2688_v32, %s2362_s24  ;;  %s2369_s24 = smov 8  }
 0x591   : > { %v1080_v22 = vpop.xlane.xlu2 %1079 }
 0x592   : > { %v1081_v24 = vsub.f32 %v1077_v18, %v1080_v22 }
 0x594   : > { %v2735_v21 = vpop.f32.mrf.mxu3  ;;  %v1082_v25 = vmul.f32 1.442695, %v1081_v24 }
 0x596   : > { %2094 = vpow2.f32 %v1082_v25 }
 0x599   : > { %v1321_v46 = vpop.permute.xlu2 %1320 }
 0x59c   : > { %v1163_v26 = vpop.f32.mrf.mxu3  ;;  %v2095_v30 = vpop.eup %2094 }
 0x59d   : > { %v1166_v27 = vmul.f32 0.35355338, %v1163_v26  ;;  %v1084_v31 = vsel %vm780_vm2, %v2095_v30, 0.0 }
 0x59f   : > { %v1167_v28 = vadd.f32 %v1166_v27, %v2680_v23 }
 0x5a1   : > { %v1168_v29 = vsel %vm780_vm2, %v1167_v28, -inf }
 0x5a2   : > { %1169 = vmax.xlane.f32.xlu1 %v1168_v29 }
 0x5aa   : > { %1085 = vadd.xlane.f32.xlu1 %v1084_v31 }
 0x5c3   : > { %1207 = vrot.lane.b32.xlu1 %v2688_v32, %s2356_s12 }
 0x5cb   : > { %1411 = vrot.lane.b32.xlu1 %v2688_v32, %s2359_s22  ;;  %s2947_s22 = sld [smem:[#allocation27_spill]] }
 0x5d1   : > { %s1719_s10 = sshll.u32 %s2947_s22, 4  ;;  %s1720_s10 = int_to_ptr.hbm [resolvable:$true] %s1719_s10 }
 0x615   : > { %v1170_v33 = vpop.xlane.xlu1 %1169 }
 0x616   : > { %v1171_v34 = vsub.f32 %v1167_v28, %v1170_v33 }
 0x618   : > { %v1172_v35 = vmul.f32 1.442695, %v1171_v34 }
 0x61a   : > { %2096 = vpow2.f32 %v1172_v35 }
 0x61d   : > { %v1086_v38 = vpop.xlane.xlu1 %1085 }
 0x620   : > { %v2097_v36 = vpop.eup %2096 }
 0x621   : > { %v1174_v37 = vsel %vm780_vm2, %v2097_v36, 0.0 }
 0x622   : > { %1175 = vadd.xlane.f32.xlu0 %v1174_v37 }
 0x635   : > { %v1208_v39 = vpop.permute.xlu1 %1207 }
 0x636   : > { %1089 = vrot.lane.b32.xlu0 %v2663_v13, %s2365_s15 }
 0x63d   : > { %v1412_v43 = vpop.permute.xlu1 %1411 }
 0x63e   : > { %1205 = vrot.lane.b32.xlu0 %v2688_v32, %s2354_s5 }
 0x646   : > { %1318 = vrot.lane.b32.xlu0 %v2688_v32, %s2358_s19 }
 0x64e   : > { %1409 = vrot.lane.b32.xlu0 %v2688_v32, %s2364_s27 }
 0x695   : > { %v1176_v40 = vpop.xlane.xlu0 %1175 }
 0x696   : > { %2098 = vrcp.f32 %v1176_v40 }
 0x697   : > { %2100 = vrcp.f32 %v1086_v38 }
 0x69c   : > { %v2099_v41 = vpop.eup %2098 }
 0x69d   : > { %v1178_v42 = vmul.f32 %v2099_v41, %v2097_v36  ;;  %v2101_v13 = vpop.eup %2100  ;;  %v2366_v36 = vmov 32.0  }
 0x69e   : > { %v1088_v44 = vmul.f32 %v2101_v13, %v2095_v30 }
 0x69f   : > { %1950 = vmatmul.msk.f32.vlgmr.msrb.gmra.mxu0 %vm780_vm2, %v1178_v42 }
 0x6a0   : > { %1960 = vmatpush.xpose.msk.msrb.mxu0 %vm780_vm2, %v1412_v43 }
 0x6a8   : > { %v1090_v45 = vpop.permute.xlu0 %1089 }
 0x6a9   : > { %1110 = vmatpush.msra.mxu2 %v1090_v45 }
 0x6aa   : > { %1946 = vmatmul.msk.f32.vlgmr.msra.gmra.mxu2 %vm780_vm2, %v1088_v44 }
 0x6ab   : > { %1951 = vmatpush.xpose.msk.msrb.mxu2 %vm780_vm2, %v1208_v39 }
 0x6af   : > { %1956 = vmatpush.xpose.msk.msra.mxu2 %vm780_vm2, %v1321_v46 }
 0x6b0   : > { %v1206_v47 = vpop.permute.xlu0 %1205 }
 0x6b2   : > { %1952 = vmatmul.msk.f32.vlgmr.msrb.gmra.mxu2 %vm780_vm2, %v1206_v47 }
 0x6b8   : > { %v1319_v48 = vpop.permute.xlu0 %1318 }
 0x6ba   : > { %1957 = vmatmul.msk.f32.vlgmr.msra.gmra.mxu2 %vm780_vm2, %v1319_v48 }
 0x6c0   : > { %v1410_v51 = vpop.permute.xlu0 %1409 }
 0x71c   : > { %v1202_v50 = vpop.f32.mrf.mxu0 }
 0x71d   : > { %1955 = vmatmul.msk.f32.vlgmr.msra.gmra.mxu0 %vm780_vm2, %v1202_v50 }
 0x725   : > { %1961 = vmatmul.msk.f32.vlgmr.msrb.gmra.mxu0 %vm780_vm2, %v1410_v51 }
 0x72d   : > { %v1112_v52 = vpop.f32.mrf.mxu2 }
 0x72e   : > { %1947 = vmatmul.msk.f32.vlgmr.msra.gmra.mxu1 %vm780_vm2, %v1112_v52  ;;  %v1574_v52 = vld [vmem:[%s2630_s0 + $0x18] sm:$0xff] }
 0x735   : > { %v1230_v53 = vpop.f32.mrf.mxu2 }
 0x736   : > { %v1233_v54 = vmul.f32 0.35355338, %v1230_v53  ;;  %v1573_v53 = vld [vmem:[%s2630_s0 + $0x10] sm:$0xff] }
 0x738   : > { %v1234_v55 = vadd.f32 %v1233_v54, %v2680_v23  ;;  %v1572_v54 = vld [vmem:[%s2630_s0 + $0x8] sm:$0xff] }
 0x73a   : > { %v1235_v56 = vsel %vm780_vm2, %v1234_v55, -inf }
 0x73b   : > { %1236 = vmax.xlane.f32.xlu1 %v1235_v56 }
 0x73d   : > { %v1343_v57 = vpop.f32.mrf.mxu2 }
 0x73e   : > { %v1346_v58 = vmul.f32 0.35355338, %v1343_v57 }
 0x740   : > { %v1347_v59 = vadd.f32 %v1346_v58, %v2680_v23 }
 0x742   : > { %v1348_v60 = vsel %vm780_vm2, %v1347_v59, -inf }
 0x743   : > { %1349 = vmax.xlane.f32.xlu0 %v1348_v60 }
 0x79a   : > { %v2771_v61 = vpop.f32.mrf.mxu0 }
 0x7a2   : > { %v1434_v62 = vpop.f32.mrf.mxu0 }
 0x7a3   : > { %v1437_v63 = vmul.f32 0.35355338, %v1434_v62 }
 0x7a5   : > { %v1438_v0 = vadd.f32 %v1437_v63, %v2680_v23  ;;  %v955_v23 = vadd.f32 %v2733_v20, %v2724_v12 }
 0x7a7   : > { %v1439_v1 = vsel %vm780_vm2, %v1438_v0, -inf  ;;  %v1047_v17 = vadd.f32 %v2735_v21, %v955_v23  ;;  %v1614_v23 = vld [vmem:[%s2640_s14 + $0x20] sm:$0xff] }
 0x7a8   : > { %1440 = vmax.xlane.f32.xlu2 %v1439_v1 }
 0x7ab   : > { %v1135_v16 = vpop.f32.mrf.mxu1 }
 0x7ac   : > { %v1138_v18 = vadd.f32 %v1135_v16, %v1047_v17  ;;  %v1613_v16 = vld [vmem:[%s2640_s14 + $0x18] sm:$0xff]  ;;  %v1612_v17 = vld [vmem:[%s2640_s14 + $0x10] sm:$0xff] }
 0x7ae   : > { %v1237_v2 = vpop.xlane.xlu1 %1236  ;;  %v1504_v22 = vadd.f32 %v2786_v19, %v1138_v18  ;;  %v1611_v18 = vld [vmem:[%s2640_s14 + $0x8] sm:$0xff] }
 0x7af   : > { %v1238_v3 = vsub.f32 %v1234_v55, %v1237_v2  ;;  %v1571_v55 = vld [vmem:[%s2630_s0] sm:$0xff] }
 0x7b0   : > { %v1506_v24 = vadd.f32 %v1504_v22, %v2654_v10  ;;  %v2814_v2 = vld [vmem:[%s2943_s2] ss:$0 sm:$0xff] }
 0x7b1   : > { %v1239_v4 = vmul.f32 1.442695, %v1238_v3  ;;  %v1610_v22 = vld [vmem:[%s2640_s14] sm:$0xff] }
 0x7b2   : > { %v1508_v25 = vsel %vm737_vm1, %v1506_v24, 0.0 }
 0x7b3   : > { %2102 = vpow2.f32 %v1239_v4 }
 0x7b6   : > { %v1350_v5 = vpop.xlane.xlu0 %1349 }
 0x7b7   : > { %v1351_v6 = vsub.f32 %v1347_v59, %v1350_v5  ;;  %v2818_v5 = vld [vmem:[%s587_s23] ss:$0 sm:$0xff] }
 0x7b9   : > { %v2103_v7 = vpop.eup %2102  ;;  %v1352_v8 = vmul.f32 1.442695, %v1351_v6 }
 0x7ba   : > { %v1241_v9 = vsel %vm780_vm2, %v2103_v7, 0.0 }
 0x7bb   : > { %2104 = vpow2.f32 %v1352_v8  ;;  %1242 = vadd.xlane.f32.xlu1 %v1241_v9  ;;  %v1617_v9 = vld [vmem:[%s2640_s14 + $0x38] sm:$0xff] }
 0x7bc   : > { %1637 = vmatpush.msra.mxu0 %v1617_v9 }
 0x7c1   : > { %v2105_v11 = vpop.eup %2104 }
 0x7c2   : > { %v1354_v15 = vsel %vm780_vm2, %v2105_v11, 0.0 }
 0x7c3   : > { %1355 = vadd.xlane.f32.xlu0 %v1354_v15  ;;  %v1615_v15 = vld [vmem:[%s2640_s14 + $0x28] sm:$0xff] }
 0x7d4   : > { %1246 = vrot.lane.b32.xlu1 %v2688_v32, %s2361_s26  ;;  %s2368_s26 = smov 128  }
 0x7d7   : > { %1359 = vrot.lane.b32.xlu0 %v2688_v32, %s2363_s28 }
 0x7fe   : > { %1509 = vadd.xlane.f32.xlu1 %v1508_v25 }
 0x81b   : > { %v1441_v26 = vpop.xlane.xlu2 %1440 }
 0x81c   : > { %v1442_v27 = vsub.f32 %v1438_v0, %v1441_v26  ;;  %v2837_v26 = vld [vmem:[%s702_s29] ss:$0 sm:$0xff] }
 0x81e   : > { %v1443_v28 = vmul.f32 1.442695, %v1442_v27 }
 0x820   : > { %2106 = vpow2.f32 %v1443_v28 }
 0x826   : > { %v2107_v29 = vpop.eup %2106 }
 0x827   : > { %v1445_v12 = vsel %vm780_vm2, %v2107_v29, 0.0 }
 0x828   : > { %1446 = vadd.xlane.f32.xlu2 %v1445_v12 }
 0x82e   : > { %v1243_v20 = vpop.xlane.xlu1 %1242 }
 0x82f   : > { %2108 = vrcp.f32 %v1243_v20 }
 0x835   : > { %v2109_v30 = vpop.eup %2108 }
 0x836   : > { %v1356_v21 = vpop.xlane.xlu0 %1355  ;;  %v1245_v10 = vmul.f32 %v2109_v30, %v2103_v7 }
 0x837   : > { %2110 = vrcp.f32 %v1356_v21 }
 0x838   : > { %2112 = vrcp.f32 %v2366_v36 }
 0x83d   : > { %v2111_v34 = vpop.eup %2110 }
 0x83e   : > { %v1358_v35 = vmul.f32 %v2111_v34, %v2105_v11  ;;  %v2113_v37 = vpop.eup %2112  ;;  %v1616_v11 = vld [vmem:[%s2640_s14 + $0x30] sm:$0xff]  ;;  %v2079_v34 = vld [vmem:[%s710_s25] ss:$0 sm:$0xff] }
 0x83f   : > { %vm1519_vm4 = vweird.f32 %v2113_v37  ;;  %1638 = vmatpush.msra.mxu0 %v1616_v11 }
 0x840   : > { %1450 = vrot.lane.b32.xlu2 %v2688_v32, %s2365_s15  ;;  %v1515_v32 = vmul.f32 32.0, %v2113_v37 }
 0x841   : > { %1639 = vmatpush.msra.mxu0 %v1615_v15 }
 0x842   : > { %v1516_v38 = vsub.f32 1.0, %v1515_v32 }
 0x843   : > { %1640 = vmatpush.msra.mxu0 %v1614_v23 }
 0x844   : > { %v1517_v39 = vmul.f32 %v2113_v37, %v1516_v38 }
 0x845   : > { %1641 = vmatpush.msra.mxu0 %v1613_v16 }
 0x846   : > { %v1247_v31 = vpop.permute.xlu1 %1246  ;;  %v1518_v40 = vadd.f32 %v2113_v37, %v1517_v39 }
 0x847   : > { %1267 = vmatpush.msrb.mxu1 %v1247_v31  ;;  %1642 = vmatpush.msra.mxu0 %v1612_v17 }
 0x848   : > { %1953 = vmatmul.msk.f32.vlgmr.msrb.gmra.mxu1 %vm780_vm2, %v1245_v10  ;;  %v2797_v41 = vsel %vm1519_vm4, %v2113_v37, %v1518_v40 }
 0x849   : > { %v1360_v33 = vpop.permute.xlu0 %1359  ;;  %1643 = vmatpush.msra.mxu0 %v1611_v18 }
 0x84a   : > { %1380 = vmatpush.msra.mxu1 %v1360_v33 }
 0x84b   : > { %1644 = vmatpush.msra.mxu0 %v1610_v22 }
 0x84c   : > { %1494 = vmatpush.msrb.mxu1 %v2761_v49 }
 0x850   : > { %1958 = vmatmul.msk.f32.vlgmr.msra.gmra.mxu1 %vm780_vm2, %v1358_v35 }
 0x871   : > { %v1510_v42 = vpop.xlane.xlu1 %1509 }
 0x872   : > { %v1521_v43 = vmul.f32 %v2797_v41, %v1510_v42 }
 0x874   : > { %v1523_v13 = vsub.f32 %v1506_v24, %v1521_v43 }
 0x876   : > { %v1525_v44 = vmul.f32 %v1523_v13, %v1523_v13 }
 0x878   : > { %v1527_v45 = vsel %vm737_vm1, %v1525_v44, 0.0 }
 0x879   : > { %1528 = vadd.xlane.f32.xlu2 %v1527_v45 }
 0x89b   : > { %v1447_v46 = vpop.xlane.xlu2 %1446 }
 0x89c   : > { %2114 = vrcp.f32 %v1447_v46 }
 0x8a2   : > { %v2115_v47 = vpop.eup %2114 }
 0x8a3   : > { %v1449_v48 = vmul.f32 %v2115_v47, %v2107_v29  ;;  %v1451_v49 = vpop.permute.xlu2 %1450 }
 0x8a4   : > { %1471 = vmatpush.msrb.mxu2 %v1451_v49 }
 0x8a5   : > { %1962 = vmatmul.msk.f32.vlgmr.msrb.gmra.mxu2 %vm780_vm2, %v1449_v48 }
 0x8c5   : > { %v1269_v50 = vpop.f32.mrf.mxu1 }
 0x8c6   : > { %1954 = vmatmul.msk.f32.vlgmr.msra.gmra.mxu3 %vm780_vm2, %v1269_v50 }
 0x8c7   : > { %1597 = vmatpush.msra.mxu3 %v1574_v52 }
 0x8c9   : > { %1598 = vmatpush.msra.mxu3 %v1573_v53 }
 0x8cb   : > { %1599 = vmatpush.msra.mxu3 %v1572_v54 }
 0x8cd   : > { %v1382_v51 = vpop.f32.mrf.mxu1  ;;  %1600 = vmatpush.msra.mxu3 %v1571_v55 }
 0x8ce   : > { %1959 = vmatmul.msk.f32.vlgmr.msrb.gmra.mxu3 %vm780_vm2, %v1382_v51 }
 0x8ec   : > { %v1529_v56 = vpop.xlane.xlu2 %1528 }
 0x8ed   : > { %v1533_v57 = vmul.f32 %v1529_v56, %v2797_v41 }
 0x8ef   : > { %v1535_v58 = vadd.f32 1e-05, %v1533_v57 }
 0x8f1   : > { %2116 = vrsqrt.f32 %v1535_v58  ;;  %vm1543_vm6 = vweird.f32 %v1535_v58 }
 0x8f7   : > { %v2117_v59 = vpop.eup %2116 }
 0x8f8   : > { %v1538_v60 = vmul.f32 %v2117_v59, %v1535_v58  ;;  %vm1544_vm5 = vweird.f32 %v2117_v59 }
 0x8f9   : > { %vm1545_vm7 = vmor %vm1543_vm6, %vm1544_vm5 }
 0x8fa   : > { %v1539_v62 = vmul.f32 %v2117_v59, %v1538_v60 }
 0x8fc   : > { %v1540_v63 = vmul.f32 0.5, %v1539_v62 }
 0x8fe   : > { %v1541_v0 = vsub.f32 1.5, %v1540_v63 }
 0x900   : > { %v1542_v1 = vmul.f32 %v2117_v59, %v1541_v0 }
 0x902   : > { %v1546_v3 = vsel %vm1545_vm7, %v2117_v59, %v1542_v1 }
 0x903   : > { %v1557_v4 = vmul.f32 %v1546_v3, %v1523_v13 }
 0x905   : > { %v1563_v6 = vmul.f32 %v2814_v2, %v1557_v4 }
 0x907   : > { %v1569_v7 = vadd.f32 %v2818_v5, %v1563_v6  ;;  %v2081_v6 = vld [vmem:[%s596_s20] ss:$0 sm:$0xff] }
 0x909   : > { %1964 = vmatmul.msk.f32.vlgmr.msra.gmra.mxu3 %vm737_vm1, %v1569_v7 }
 0x928   : > { %v1473_v8 = vpop.f32.mrf.mxu2 }
 0x929   : > { %1963 = vmatmul.msk.f32.vlgmr.msrb.gmra.mxu1 %vm780_vm2, %v1473_v8 }
 0x949   : > { %v1292_v24 = vpop.f32.mrf.mxu3 }
 0x94a   : > { %v1316_v12 = vadd.f32 %v2771_v61, %v1292_v24 }
 0x951   : > { %v1405_v25 = vpop.f32.mrf.mxu3 }
 0x952   : > { %v1408_v20 = vadd.f32 %v1405_v25, %v1316_v12 }
 0x98c   : > { %v1602_v27 = vpop.f32.mrf.mxu3 }
 0x98d   : > { %v1603_v28 = vadd.f32 %v2837_v26, %v1602_v27 }
 0x98f   : > { %v1608_v29 = vmax.f32 %v1603_v28, 0.0 }
 0x991   : > { %1966 = vmatmul.msk.f32.vlgmr.msra.gmra.mxu0 %vm1622_vm8, %v1608_v29 }
 0x9a6   : > { %v1496_v21 = vpop.f32.mrf.mxu1 }
 0x9a7   : > { %v1499_v30 = vadd.f32 %v1496_v21, %v1408_v20 }
 0x9a9   : > { %v1505_v10 = vadd.f32 %v2786_v19, %v1499_v30 }
 0x9ab   : > { %v1507_v31 = vadd.f32 %v1505_v10, %v2671_v14 }
 0x9ad   : > { %v1511_v33 = vsel %vm737_vm1, %v1507_v31, 0.0 }
 0x9ae   : > { %1512 = vadd.xlane.f32.xlu0 %v1511_v33 }
 0xa0e   : > { %v1646_v35 = vpop.f32.mrf.mxu0 }
 0xa0f   : > { %v1647_v36 = vadd.f32 %v2079_v34, %v1646_v35 }
 0xa11   : > { %v1652_v37 = vadd.f32 %v1647_v36, %v1569_v7 }
 0xa13   : > { %v1654_v61 = vsel %vm737_vm1, %v1652_v37, 0.0 }
 0xa14   : > { %1655 = vadd.xlane.f32.xlu0 %v1654_v61 }
 0xa21   : > { %v1513_v32 = vpop.xlane.xlu0 %1512 }
 0xa22   : > { %v1522_v38 = vmul.f32 %v2797_v41, %v1513_v32 }
 0xa24   : > { %v1524_v19 = vsub.f32 %v1507_v31, %v1522_v38 }
 0xa26   : > { %v1526_v39 = vmul.f32 %v1524_v19, %v1524_v19 }
 0xa28   : > { %v1530_v14 = vsel %vm737_vm1, %v1526_v39, 0.0 }
 0xa29   : > { %1531 = vadd.xlane.f32.xlu1 %v1530_v14 }
 0xa87   : > { %v1656_v40 = vpop.xlane.xlu0 %1655 }
 0xa88   : > { %v1660_v42 = vmul.f32 %v1656_v40, %v2797_v41 }
 0xa8a   : > { %v1662_v43 = vsub.f32 %v1652_v37, %v1660_v42 }
 0xa8c   : > { %v1664_v13 = vmul.f32 %v1662_v43, %v1662_v43 }
 0xa8e   : > { %v1666_v44 = vsel %vm737_vm1, %v1664_v13, 0.0 }
 0xa8f   : > { %1667 = vadd.xlane.f32.xlu0 %v1666_v44 }
 0xa9c   : > { %v1532_v45 = vpop.xlane.xlu1 %1531 }
 0xa9d   : > { %v1534_v46 = vmul.f32 %v1532_v45, %v2797_v41 }
 0xa9f   : > { %v1536_v47 = vadd.f32 1e-05, %v1534_v46 }
 0xaa1   : > { %2118 = vrsqrt.f32 %v1536_v47  ;;  %vm1553_vm10 = vweird.f32 %v1536_v47 }
 0xaa7   : > { %v2119_v48 = vpop.eup %2118 }
 0xaa8   : > { %v1548_v49 = vmul.f32 %v2119_v48, %v1536_v47  ;;  %vm1554_vm9 = vweird.f32 %v2119_v48 }
 0xaa9   : > { %vm1555_vm11 = vmor %vm1553_vm10, %vm1554_vm9 }
 0xaaa   : > { %v1549_v50 = vmul.f32 %v2119_v48, %v1548_v49 }
 0xaac   : > { %v1550_v51 = vmul.f32 0.5, %v1549_v50 }
 0xaae   : > { %v1551_v52 = vsub.f32 1.5, %v1550_v51 }
 0xab0   : > { %v1552_v53 = vmul.f32 %v2119_v48, %v1551_v52 }
 0xab2   : > { %v1556_v54 = vsel %vm1555_vm11, %v2119_v48, %v1552_v53 }
 0xab3   : > { %v1558_v55 = vmul.f32 %v1556_v54, %v1524_v19 }
 0xab5   : > { %v1564_v56 = vmul.f32 %v2814_v2, %v1558_v55  ;;  %v2080_v2 = vld [vmem:[%s713_s9] ss:$0 sm:$0xff] }
 0xab7   : > { %v1570_v57 = vadd.f32 %v2818_v5, %v1564_v56 }
 0xab9   : > { %1965 = vmatmul.msk.f32.gmra.mxu3 %vm737_vm1, %v1570_v57 }
 0xb02   : > { %v1668_v58 = vpop.xlane.xlu0 %1667 }
 0xb03   : > { %v1672_v59 = vmul.f32 %v1668_v58, %v2797_v41 }
 0xb05   : > { %v1674_v60 = vadd.f32 1e-05, %v1672_v59 }
 0xb07   : > { %2120 = vrsqrt.f32 %v1674_v60  ;;  %vm1682_vm13 = vweird.f32 %v1674_v60 }
 0xb0d   : > { %v2121_v62 = vpop.eup %2120 }
 0xb0e   : > { %v1677_v63 = vmul.f32 %v2121_v62, %v1674_v60  ;;  %vm1683_vm12 = vweird.f32 %v2121_v62 }
 0xb0f   : > { %vm1684_vm14 = vmor %vm1682_vm13, %vm1683_vm12 }
 0xb10   : > { %v1678_v0 = vmul.f32 %v2121_v62, %v1677_v63 }
 0xb12   : > { %v1679_v1 = vmul.f32 0.5, %v1678_v0 }
 0xb14   : > { %v1680_v3 = vsub.f32 1.5, %v1679_v1 }
 0xb16   : > { %v1681_v4 = vmul.f32 %v2121_v62, %v1680_v3 }
 0xb18   : > { %v1685_v5 = vsel %vm1684_vm14, %v2121_v62, %v1681_v4 }
 0xb19   : > { %v1696_v7 = vmul.f32 %v1685_v5, %v1662_v43 }
 0xb1b   : > { %v1702_v8 = vmul.f32 %v2080_v2, %v1696_v7 }
 0xb1d   : > { %v1708_v9 = vadd.f32 %v2081_v6, %v1702_v8 }
 0xb1f   : > { %1710 = vst.msk [vmem:[#allocation10] sm:$0xff] %vm737_vm1, %v1708_v9 }
 0xb3c   : > { %v1605_v11 = vpop.f32.mrf.mxu3 }
 0xb3d   : > { %v1606_v15 = vadd.f32 %v2837_v26, %v1605_v11 }
 0xb3f   : > { %v1609_v23 = vmax.f32 %v1606_v15, 0.0 }
 0xb41   : > { %1967 = vmatmul.msk.f32.gmra.mxu0 %vm1622_vm8, %v1609_v23 }
 0xbbe   : > { %v1649_v16 = vpop.f32.mrf.mxu0 }
 0xbbf   : > { %v1650_v17 = vadd.f32 %v2079_v34, %v1649_v16 }
 0xbc1   : > { %v1653_v18 = vadd.f32 %v1650_v17, %v1570_v57 }
 0xbc3   : > { %v1657_v22 = vsel %vm737_vm1, %v1653_v18, 0.0 }
 0xbc4   : > { %1658 = vadd.xlane.f32.xlu1 %v1657_v22 }
 0xc37   : > { %v1659_v24 = vpop.xlane.xlu1 %1658 }
 0xc38   : > { %v1661_v25 = vmul.f32 %v1659_v24, %v2797_v41 }
 0xc3a   : > { %v1663_v27 = vsub.f32 %v1653_v18, %v1661_v25 }
 0xc3c   : > { %v1665_v28 = vmul.f32 %v1663_v27, %v1663_v27 }
 0xc3e   : > { %v1669_v29 = vsel %vm737_vm1, %v1665_v28, 0.0 }
 0xc3f   : > { %1670 = vadd.xlane.f32.xlu2 %v1669_v29 }
 0xcb2   : > { %v1671_v12 = vpop.xlane.xlu2 %1670 }
 0xcb3   : > { %v1673_v26 = vmul.f32 %v1671_v12, %v2797_v41 }
 0xcb5   : > { %v1675_v20 = vadd.f32 1e-05, %v1673_v26 }
 0xcb7   : > { %2122 = vrsqrt.f32 %v1675_v20  ;;  %vm1692_vm0 = vweird.f32 %v1675_v20 }
 0xcbd   : > { %v2123_v21 = vpop.eup %2122 }
 0xcbe   : > { %v1687_v30 = vmul.f32 %v2123_v21, %v1675_v20  ;;  %vm1693_vm15 = vweird.f32 %v2123_v21 }
 0xcbf   : > { %vm1694_vm2 = vmor %vm1692_vm0, %vm1693_vm15 }
 0xcc0   : > { %v1688_v10 = vmul.f32 %v2123_v21, %v1687_v30 }
 0xcc2   : > { %v1689_v31 = vmul.f32 0.5, %v1688_v10 }
 0xcc4   : > { %v1690_v33 = vsub.f32 1.5, %v1689_v31 }
 0xcc6   : > { %v1691_v34 = vmul.f32 %v2123_v21, %v1690_v33 }
 0xcc8   : > { %v1695_v35 = vsel %vm1694_vm2, %v2123_v21, %v1691_v34 }
 0xcc9   : > { %v1697_v36 = vmul.f32 %v1695_v35, %v1663_v27 }
 0xccb   : > { %v1703_v41 = vmul.f32 %v2080_v2, %v1697_v36 }
 0xccd   : > { %v1709_v37 = vadd.f32 %v2081_v6, %v1703_v41 }
 0xccf   : > { %1711 = vst.msk [vmem:[#allocation10 + $0x8] sm:$0xff] %vm737_vm1, %v1709_v37 }
 0xcd0   : > { %1995 = dma.vmem_to_hbm [thread:$0]  (%p2020_p5), %s1718_s11, 256, %s1720_s10, [#allocation4], %s2368_s26, %s2368_s26, %s2369_s24  }
 0xcd1   : > { %2331 = dma.done.wait (%p2020_p5), [#allocation4], 256  }
 0xcd2   : > { %2333 = vsyncadd (%p2020_p5), [#allocation4], 4294967040 }
 0xcd3 PF: > { %s2948_s16 = sld [smem:[#allocation16_spill]]  ;;  %s2951_s29 = smov %s2340_s30 }
 0xcd4   : > { %s2949_s28 = sld [smem:[#allocation15_spill]] }
 0xcd5   : > { %s2950_s15 = sld [smem:[#allocation17_spill]] }
 0xcd9   : > { %p24_p0 = scmp.ge.s32.totalorder %s2948_s16, 4  }
 0xcda   : > { %s2952_s30 = smov %s2949_s28 }
 0xcdb   :  { %26 = sbr.rel (!%p24_p0) target bundleno = 15 (0xf), region = 173 }
 0xce0   :  { %1736 = vsyncpa [#allocation3], 1 }
 0xce1   :  { %1738 = vsyncpa [#allocation3 + $0x1], 1 }
 0xce2   :  { %1739 = vsyncpa [#allocation6], 1 }
 0xce3   :  { %1740 = vsyncpa [#allocation4], 1 }
 0xce4   :  { %1742 = vsyncpa [#allocation4 + $0x1], 1 }

</bundles_post_ra>
